<compile_context>
chip_gen: v5e
topology: v5e:2x2
jax: 0.10.0
libtpu: 0.0.40
codegen_flags: <defaults>
</compile_context>

<pallas_src>
import math
import numpy as np
import jax
import jax.numpy as jnp
from jax import lax
from jax.experimental import pallas as pl
from jax.experimental.pallas import tpu as pltpu

# ----------------------- problem sizes (small, synthetic) -----------------------
STATE_SIZE = 16
HIDDEN = 32
NB_HEADS = 4
HEAD_DIM = HIDDEN // NB_HEADS
INNER = 64
NB_LAYERS = 2
BATCH = 2
N_QUERY = 8     # block_size (query sequence length)
M_KV = 8        # embedding sequence length
LN_EPS = 1e-5


# ------------------------------- kernel helpers --------------------------------
def _layer_norm(x, g, b):
    mean = jnp.mean(x, axis=-1, keepdims=True)
    var = jnp.mean((x - mean) ** 2, axis=-1, keepdims=True)
    return (x - mean) * lax.rsqrt(var + LN_EPS) * g + b


# --------------------------- fused QDecoder kernel ------------------------------
def qdecoder_kernel(x_ref, emb_ref, we_ref, be_ref,
                    a_ref, bmat_ref, w1_ref, bf1_ref, w2_ref, vecs_ref,
                    o_ref):
    # x_ref:    (1, N, S)
    # emb_ref:  (1, M, H)
    # we_ref:   (S, H)                init_embed weight (pre-transposed)
    # be_ref:   (1, H)                init_embed bias
    # a_ref:    (L, NB_HEADS*H, H)    rows [hd*H:(hd+1)*H] = Wq_hd @ Wk_hd^T
    # bmat_ref: (L, NB_HEADS*H, H)    rows [hd*H:(hd+1)*H] = Wv_hd @ Wo_hd
    # w1_ref:   (L, H, INNER)         ff fc1 weight (pre-transposed)
    # bf1_ref:  (L, 1, INNER)         ff fc1 bias
    # w2_ref:   (L, INNER, H)         ff fc2 weight (pre-transposed)
    # vecs_ref: (L, 5, H)             rows: ln1_gamma, ln1_beta, ln2_gamma, ln2_beta, ff_b2
    # o_ref:    (1, N, H)
    x = x_ref[0]          # (N, S)
    emb = emb_ref[0]      # (M, H)

    # init embed
    h = jnp.dot(x, we_ref[...], preferred_element_type=jnp.float32) + be_ref[...]

    scale = 1.0 / math.sqrt(HEAD_DIM)

    for l in range(NB_LAYERS):          # static unrolled layer loop (weights VMEM-resident)
        a_l = a_ref[l]                  # (NB_HEADS*H, H)
        b_l = bmat_ref[l]               # (NB_HEADS*H, H)
        vl = vecs_ref[l]                # (5, H)

        # ---- multi-head attention (head projections folded into A_h / B_h) ----
        attn_out = jnp.zeros_like(h)
        for hd in range(NB_HEADS):      # static unrolled; all slices sublane-aligned
            lo = hd * HIDDEN
            hi = lo + HIDDEN
            hA = jnp.dot(h, a_l[lo:hi, :], preferred_element_type=jnp.float32)    # (N, H)
            s = lax.dot_general(hA, emb, (((1,), (1,)), ((), ())),
                                preferred_element_type=jnp.float32) * scale       # (N, M)
            s = s - jnp.max(s, axis=-1, keepdims=True)
            p = jnp.exp(s)
            p = p / jnp.sum(p, axis=-1, keepdims=True)
            embB = jnp.dot(emb, b_l[lo:hi, :], preferred_element_type=jnp.float32)  # (M, H)
            attn_out = attn_out + jnp.dot(p, embB, preferred_element_type=jnp.float32)

        # ---- residual + norm1 ----
        h1 = _layer_norm(h + attn_out, vl[0:1, :], vl[1:2, :])

        # ---- feed-forward (dropout identity at inference) ----
        f = jnp.maximum(
            jnp.dot(h1, w1_ref[l], preferred_element_type=jnp.float32) + bf1_ref[l],
            0.0)
        f = jnp.dot(f, w2_ref[l], preferred_element_type=jnp.float32) + vl[4:5, :]

        # ---- residual + norm2 ----
        h = _layer_norm(h1 + f, vl[2:3, :], vl[3:4, :])

    o_ref[0] = h


# --------------------------------- wrapper --------------------------------------
def qdecoder_forward(x, embedding, packed):
    B, N, S = x.shape
    M = embedding.shape[1]
    H = HIDDEN
    L = NB_LAYERS
    HH = NB_HEADS * H
    return pl.pallas_call(
        qdecoder_kernel,
        out_shape=jax.ShapeDtypeStruct((B, N, H), jnp.float32),
        grid=(B,),
        in_specs=[
            pl.BlockSpec((1, N, S), lambda b: (b, 0, 0)),        # x
            pl.BlockSpec((1, M, H), lambda b: (b, 0, 0)),        # embedding
            pl.BlockSpec((S, H), lambda b: (0, 0)),              # we
            pl.BlockSpec((1, H), lambda b: (0, 0)),              # be
            pl.BlockSpec((L, HH, H), lambda b: (0, 0, 0)),       # A  (Wq_h Wk_h^T stacked)
            pl.BlockSpec((L, HH, H), lambda b: (0, 0, 0)),       # B  (Wv_h Wo_h stacked)
            pl.BlockSpec((L, H, INNER), lambda b: (0, 0, 0)),    # ff w1
            pl.BlockSpec((L, 1, INNER), lambda b: (0, 0, 0)),    # ff b1
            pl.BlockSpec((L, INNER, H), lambda b: (0, 0, 0)),    # ff w2
            pl.BlockSpec((L, 5, H), lambda b: (0, 0, 0)),        # ln1/ln2 affine + ff b2
        ],
        out_specs=pl.BlockSpec((1, N, H), lambda b: (b, 0, 0)),
        compiler_params=pltpu.CompilerParams(dimension_semantics=("parallel",)),
    )(x, embedding, packed["we"], packed["be"], packed["A"], packed["B"],
      packed["w1"], packed["bf1"], packed["w2"], packed["vecs"])


# ------------------------------ parameter setup ---------------------------------
def make_params(key):
    def lin(k, fan_in, shape):
        return jax.random.normal(k, shape, jnp.float32) / math.sqrt(fan_in)

    keys = iter(jax.random.split(key, 2 + NB_LAYERS * 12))
    params = {
        # init_embed: Linear(state_size, hidden) — stored transposed (S, H)
        "we": lin(next(keys), STATE_SIZE, (STATE_SIZE, HIDDEN)),
        "be": lin(next(keys), STATE_SIZE, (1, HIDDEN)),
        "layers": [],
    }
    for _ in range(NB_LAYERS):
        lp = {
            "wq": lin(next(keys), HIDDEN, (HIDDEN, HIDDEN)),
            "wk": lin(next(keys), HIDDEN, (HIDDEN, HIDDEN)),
            "wv": lin(next(keys), HIDDEN, (HIDDEN, HIDDEN)),
            "wo": lin(next(keys), HIDDEN, (HIDDEN, HIDDEN)),
            "g1": 1.0 + 0.1 * jax.random.normal(next(keys), (1, HIDDEN), jnp.float32),
            "b1": 0.1 * jax.random.normal(next(keys), (1, HIDDEN), jnp.float32),
            "w1": lin(next(keys), HIDDEN, (HIDDEN, INNER)),
            "bf1": lin(next(keys), HIDDEN, (1, INNER)),
            "w2": lin(next(keys), INNER, (INNER, HIDDEN)),
            "bf2": lin(next(keys), INNER, (1, HIDDEN)),
            "g2": 1.0 + 0.1 * jax.random.normal(next(keys), (1, HIDDEN), jnp.float32),
            "b2": 0.1 * jax.random.normal(next(keys), (1, HIDDEN), jnp.float32),
        }
        params["layers"].append(lp)
    return params


def pack_params(params):
    """Fold per-head projections and stack per-layer tensors for the fused kernel."""
    a_list, b_list, w1_list, bf1_list, w2_list, vec_list = [], [], [], [], [], []
    for lp in params["layers"]:
        a_blocks, b_blocks = [], []
        for hd in range(NB_HEADS):
            lo = hd * HEAD_DIM
            hi = lo + HEAD_DIM
            # s_h = q_h k_h^T = h (Wq_h Wk_h^T) emb^T  -> A_h = Wq_h @ Wk_h^T  (H, H)
            a_blocks.append(lp["wq"][:, lo:hi] @ lp["wk"][:, lo:hi].T)
            # out_h = p_h emb (Wv_h Wo_h)              -> B_h = Wv_h @ Wo_h    (H, H)
            b_blocks.append(lp["wv"][:, lo:hi] @ lp["wo"][lo:hi, :])
        a_list.append(jnp.concatenate(a_blocks, axis=0))    # (NB_HEADS*H, H)
        b_list.append(jnp.concatenate(b_blocks, axis=0))    # (NB_HEADS*H, H)
        w1_list.append(lp["w1"])
        bf1_list.append(lp["bf1"])
        w2_list.append(lp["w2"])
        vec_list.append(jnp.concatenate(
            [lp["g1"], lp["b1"], lp["g2"], lp["b2"], lp["bf2"]], axis=0))  # (5, H)
    return {
        "we": params["we"], "be": params["be"],
        "A": jnp.stack(a_list), "B": jnp.stack(b_list),
        "w1": jnp.stack(w1_list), "bf1": jnp.stack(bf1_list),
        "w2": jnp.stack(w2_list), "vecs": jnp.stack(vec_list),
    }


# ------------------------------ pure-JAX reference -------------------------------
def _ln_ref(x, g, b):
    mean = jnp.mean(x, axis=-1, keepdims=True)
    var = jnp.mean((x - mean) ** 2, axis=-1, keepdims=True)
    return (x - mean) / jnp.sqrt(var + LN_EPS) * g + b


def reference_forward(x, emb, params):
    h = x @ params["we"] + params["be"][0]
    B, N, H = h.shape
    M = emb.shape[1]
    for lp in params["layers"]:
        q = (h @ lp["wq"]).reshape(B, N, NB_HEADS, HEAD_DIM).transpose(0, 2, 1, 3)
        k = (emb @ lp["wk"]).reshape(B, M, NB_HEADS, HEAD_DIM).transpose(0, 2, 1, 3)
        v = (emb @ lp["wv"]).reshape(B, M, NB_HEADS, HEAD_DIM).transpose(0, 2, 1, 3)
        s = jnp.einsum("bhnd,bhmd->bhnm", q, k) / math.sqrt(HEAD_DIM)
        p = jax.nn.softmax(s, axis=-1)
        ctx = jnp.einsum("bhnm,bhmd->bhnd", p, v).transpose(0, 2, 1, 3).reshape(B, N, H)
        attn_out = ctx @ lp["wo"]
        h1 = _ln_ref(h + attn_out, lp["g1"][0], lp["b1"][0])
        f = jnp.maximum(h1 @ lp["w1"] + lp["bf1"][0], 0.0) @ lp["w2"] + lp["bf2"][0]
        h = _ln_ref(h1 + f, lp["g2"][0], lp["b2"][0])
    return h


# ------------------------------------ main ---------------------------------------
if __name__ == "__main__":
    key = jax.random.PRNGKey(0)
    k_x, k_emb, k_p = jax.random.split(key, 3)

    x = jax.random.normal(k_x, (BATCH, N_QUERY, STATE_SIZE), jnp.float32)
    embedding = jax.random.normal(k_emb, (BATCH, M_KV, HIDDEN), jnp.float32)
    params = make_params(k_p)
    packed = pack_params(params)

    out = qdecoder_forward(x, embedding, packed)
    out = jax.block_until_ready(out)

    ref = jax.block_until_ready(reference_forward(x, embedding, params))
    assert out.shape == (BATCH, N_QUERY, HIDDEN), out.shape
    np.testing.assert_allclose(np.asarray(out), np.asarray(ref), rtol=5e-4, atol=5e-4)

    print("KERNEL_OK")
</pallas_src>

<mosaic_0001>
module attributes {stable_mosaic.version = 11 : i64} {
  func.func @qdecoder_kernel(%arg0: i32, %arg1: memref<1x8x16xf32, #tpu.memory_space<vmem>>, %arg2: memref<1x8x32xf32, #tpu.memory_space<vmem>>, %arg3: memref<16x32xf32, #tpu.memory_space<vmem>>, %arg4: memref<1x32xf32, #tpu.memory_space<vmem>>, %arg5: memref<2x128x32xf32, #tpu.memory_space<vmem>>, %arg6: memref<2x128x32xf32, #tpu.memory_space<vmem>>, %arg7: memref<2x32x64xf32, #tpu.memory_space<vmem>>, %arg8: memref<2x1x64xf32, #tpu.memory_space<vmem>>, %arg9: memref<2x64x32xf32, #tpu.memory_space<vmem>>, %arg10: memref<2x5x32xf32, #tpu.memory_space<vmem>>, %arg11: memref<1x8x32xf32, #tpu.memory_space<vmem>>) attributes {dimension_semantics = [#tpu.dimension_semantics<parallel>], iteration_bounds = array<i64: 2>, scalar_prefetch = 0 : i64, scratch_operands = 0 : i64, tpu.core_type = #tpu.core_type<tc>, window_params = [{transform_indices = @transform_0, window_bounds = array<i64: 1, 8, 16>}, {transform_indices = @transform_1, window_bounds = array<i64: 1, 8, 32>}, {pipeline_mode = #tpu.pipeline_mode<synchronous>, transform_indices = @transform_2, window_bounds = array<i64: 16, 32>}, {pipeline_mode = #tpu.pipeline_mode<synchronous>, transform_indices = @transform_3, window_bounds = array<i64: 1, 32>}, {pipeline_mode = #tpu.pipeline_mode<synchronous>, transform_indices = @transform_4, window_bounds = array<i64: 2, 128, 32>}, {pipeline_mode = #tpu.pipeline_mode<synchronous>, transform_indices = @transform_5, window_bounds = array<i64: 2, 128, 32>}, {pipeline_mode = #tpu.pipeline_mode<synchronous>, transform_indices = @transform_6, window_bounds = array<i64: 2, 32, 64>}, {pipeline_mode = #tpu.pipeline_mode<synchronous>, transform_indices = @transform_7, window_bounds = array<i64: 2, 1, 64>}, {pipeline_mode = #tpu.pipeline_mode<synchronous>, transform_indices = @transform_8, window_bounds = array<i64: 2, 64, 32>}, {pipeline_mode = #tpu.pipeline_mode<synchronous>, transform_indices = @transform_9, window_bounds = array<i64: 2, 5, 32>}, {transform_indices = @transform_10, window_bounds = array<i64: 1, 8, 32>}]} {
    %c0 = arith.constant 0 : index
    %c0_0 = arith.constant 0 : index
    %c0_1 = arith.constant 0 : index
    %0 = vector.load %arg1[%c0, %c0_0, %c0_1] : memref<1x8x16xf32, #tpu.memory_space<vmem>>, vector<1x8x16xf32>
    %1 = vector.shape_cast %0 : vector<1x8x16xf32> to vector<8x16xf32>
    %c0_2 = arith.constant 0 : index
    %c0_3 = arith.constant 0 : index
    %c0_4 = arith.constant 0 : index
    %2 = vector.load %arg2[%c0_2, %c0_3, %c0_4] : memref<1x8x32xf32, #tpu.memory_space<vmem>>, vector<1x8x32xf32>
    %3 = vector.shape_cast %2 : vector<1x8x32xf32> to vector<8x32xf32>
    %c0_5 = arith.constant 0 : index
    %c0_6 = arith.constant 0 : index
    %4 = vector.load %arg3[%c0_5, %c0_6] : memref<16x32xf32, #tpu.memory_space<vmem>>, vector<16x32xf32>
    %cst = arith.constant dense<0.000000e+00> : vector<8x32xf32>
    %5 = tpu.matmul %1, %4, %cst {dimension_numbers = #tpu.dot_dimension_numbers<[1], [0], [0], [1], [0, 0, 1, 1], [], []>} : vector<8x16xf32>, vector<16x32xf32>, vector<8x32xf32> -> vector<8x32xf32>
    %c0_7 = arith.constant 0 : index
    %c0_8 = arith.constant 0 : index
    %6 = vector.load %arg4[%c0_7, %c0_8] : memref<1x32xf32, #tpu.memory_space<vmem>>, vector<1x32xf32>
    %7 = vector.broadcast %6 : vector<1x32xf32> to vector<8x32xf32>
    %8 = arith.addf %5, %7 : vector<8x32xf32>
    %c0_9 = arith.constant 0 : index
    %c0_10 = arith.constant 0 : index
    %c0_11 = arith.constant 0 : index
    %9 = vector.load %arg5[%c0_9, %c0_10, %c0_11] : memref<2x128x32xf32, #tpu.memory_space<vmem>>, vector<1x128x32xf32>
    %10 = vector.shape_cast %9 : vector<1x128x32xf32> to vector<128x32xf32>
    %c0_12 = arith.constant 0 : index
    %c0_13 = arith.constant 0 : index
    %c0_14 = arith.constant 0 : index
    %11 = vector.load %arg6[%c0_12, %c0_13, %c0_14] : memref<2x128x32xf32, #tpu.memory_space<vmem>>, vector<1x128x32xf32>
    %12 = vector.shape_cast %11 : vector<1x128x32xf32> to vector<128x32xf32>
    %c0_15 = arith.constant 0 : index
    %c0_16 = arith.constant 0 : index
    %c0_17 = arith.constant 0 : index
    %13 = vector.load %arg10[%c0_15, %c0_16, %c0_17] : memref<2x5x32xf32, #tpu.memory_space<vmem>>, vector<1x5x32xf32>
    %14 = vector.shape_cast %13 : vector<1x5x32xf32> to vector<5x32xf32>
    %cst_18 = arith.constant 0.000000e+00 : f32
    %15 = vector.broadcast %cst_18 : f32 to vector<8x32xf32>
    %16 = vector.extract_strided_slice %10 {offsets = [0, 0], sizes = [32, 32], strides = [1, 1]} : vector<128x32xf32> to vector<32x32xf32>
    %cst_19 = arith.constant dense<0.000000e+00> : vector<8x32xf32>
    %17 = tpu.matmul %8, %16, %cst_19 {dimension_numbers = #tpu.dot_dimension_numbers<[1], [0], [0], [1], [0, 0, 1, 1], [], []>} : vector<8x32xf32>, vector<32x32xf32>, vector<8x32xf32> -> vector<8x32xf32>
    %cst_20 = arith.constant dense<0.000000e+00> : vector<8x8xf32>
    %18 = tpu.matmul %17, %3, %cst_20 {dimension_numbers = #tpu.dot_dimension_numbers<[1], [1], [0], [0], [0, 0, 1, 0], [], []>} : vector<8x32xf32>, vector<8x32xf32>, vector<8x8xf32> -> vector<8x8xf32>
    %cst_21 = arith.constant 0.353553385 : f32
    %19 = vector.broadcast %cst_21 : f32 to vector<8x8xf32>
    %20 = arith.mulf %18, %19 : vector<8x8xf32>
    %cst_22 = arith.constant dense<0xFF800000> : vector<8xf32>
    %21 = vector.multi_reduction <maximumf>, %20, %cst_22 [1] : vector<8x8xf32> to vector<8xf32>
    %22 = vector.shape_cast %21 : vector<8xf32> to vector<8x1xf32>
    %23 = vector.broadcast %22 : vector<8x1xf32> to vector<8x8xf32>
    %24 = arith.subf %20, %23 : vector<8x8xf32>
    %25 = math.exp %24 : vector<8x8xf32>
    %cst_23 = arith.constant dense<0.000000e+00> : vector<8xf32>
    %26 = vector.multi_reduction <add>, %25, %cst_23 [1] : vector<8x8xf32> to vector<8xf32>
    %27 = vector.shape_cast %26 : vector<8xf32> to vector<8x1xf32>
    %28 = vector.broadcast %27 : vector<8x1xf32> to vector<8x8xf32>
    %29 = arith.divf %25, %28 : vector<8x8xf32>
    %30 = vector.extract_strided_slice %12 {offsets = [0, 0], sizes = [32, 32], strides = [1, 1]} : vector<128x32xf32> to vector<32x32xf32>
    %cst_24 = arith.constant dense<0.000000e+00> : vector<8x32xf32>
    %31 = tpu.matmul %3, %30, %cst_24 {dimension_numbers = #tpu.dot_dimension_numbers<[1], [0], [0], [1], [0, 0, 1, 1], [], []>} : vector<8x32xf32>, vector<32x32xf32>, vector<8x32xf32> -> vector<8x32xf32>
    %cst_25 = arith.constant dense<0.000000e+00> : vector<8x32xf32>
    %32 = tpu.matmul %29, %31, %cst_25 {dimension_numbers = #tpu.dot_dimension_numbers<[1], [0], [0], [1], [0, 0, 1, 1], [], []>} : vector<8x8xf32>, vector<8x32xf32>, vector<8x32xf32> -> vector<8x32xf32>
    %33 = arith.addf %15, %32 : vector<8x32xf32>
    %34 = vector.extract_strided_slice %10 {offsets = [32, 0], sizes = [32, 32], strides = [1, 1]} : vector<128x32xf32> to vector<32x32xf32>
    %cst_26 = arith.constant dense<0.000000e+00> : vector<8x32xf32>
    %35 = tpu.matmul %8, %34, %cst_26 {dimension_numbers = #tpu.dot_dimension_numbers<[1], [0], [0], [1], [0, 0, 1, 1], [], []>} : vector<8x32xf32>, vector<32x32xf32>, vector<8x32xf32> -> vector<8x32xf32>
    %cst_27 = arith.constant dense<0.000000e+00> : vector<8x8xf32>
    %36 = tpu.matmul %35, %3, %cst_27 {dimension_numbers = #tpu.dot_dimension_numbers<[1], [1], [0], [0], [0, 0, 1, 0], [], []>} : vector<8x32xf32>, vector<8x32xf32>, vector<8x8xf32> -> vector<8x8xf32>
    %cst_28 = arith.constant 0.353553385 : f32
    %37 = vector.broadcast %cst_28 : f32 to vector<8x8xf32>
    %38 = arith.mulf %36, %37 : vector<8x8xf32>
    %cst_29 = arith.constant dense<0xFF800000> : vector<8xf32>
    %39 = vector.multi_reduction <maximumf>, %38, %cst_29 [1] : vector<8x8xf32> to vector<8xf32>
    %40 = vector.shape_cast %39 : vector<8xf32> to vector<8x1xf32>
    %41 = vector.broadcast %40 : vector<8x1xf32> to vector<8x8xf32>
    %42 = arith.subf %38, %41 : vector<8x8xf32>
    %43 = math.exp %42 : vector<8x8xf32>
    %cst_30 = arith.constant dense<0.000000e+00> : vector<8xf32>
    %44 = vector.multi_reduction <add>, %43, %cst_30 [1] : vector<8x8xf32> to vector<8xf32>
    %45 = vector.shape_cast %44 : vector<8xf32> to vector<8x1xf32>
    %46 = vector.broadcast %45 : vector<8x1xf32> to vector<8x8xf32>
    %47 = arith.divf %43, %46 : vector<8x8xf32>
    %48 = vector.extract_strided_slice %12 {offsets = [32, 0], sizes = [32, 32], strides = [1, 1]} : vector<128x32xf32> to vector<32x32xf32>
    %cst_31 = arith.constant dense<0.000000e+00> : vector<8x32xf32>
    %49 = tpu.matmul %3, %48, %cst_31 {dimension_numbers = #tpu.dot_dimension_numbers<[1], [0], [0], [1], [0, 0, 1, 1], [], []>} : vector<8x32xf32>, vector<32x32xf32>, vector<8x32xf32> -> vector<8x32xf32>
    %cst_32 = arith.constant dense<0.000000e+00> : vector<8x32xf32>
    %50 = tpu.matmul %47, %49, %cst_32 {dimension_numbers = #tpu.dot_dimension_numbers<[1], [0], [0], [1], [0, 0, 1, 1], [], []>} : vector<8x8xf32>, vector<8x32xf32>, vector<8x32xf32> -> vector<8x32xf32>
    %51 = arith.addf %33, %50 : vector<8x32xf32>
    %52 = vector.extract_strided_slice %10 {offsets = [64, 0], sizes = [32, 32], strides = [1, 1]} : vector<128x32xf32> to vector<32x32xf32>
    %cst_33 = arith.constant dense<0.000000e+00> : vector<8x32xf32>
    %53 = tpu.matmul %8, %52, %cst_33 {dimension_numbers = #tpu.dot_dimension_numbers<[1], [0], [0], [1], [0, 0, 1, 1], [], []>} : vector<8x32xf32>, vector<32x32xf32>, vector<8x32xf32> -> vector<8x32xf32>
    %cst_34 = arith.constant dense<0.000000e+00> : vector<8x8xf32>
    %54 = tpu.matmul %53, %3, %cst_34 {dimension_numbers = #tpu.dot_dimension_numbers<[1], [1], [0], [0], [0, 0, 1, 0], [], []>} : vector<8x32xf32>, vector<8x32xf32>, vector<8x8xf32> -> vector<8x8xf32>
    %cst_35 = arith.constant 0.353553385 : f32
    %55 = vector.broadcast %cst_35 : f32 to vector<8x8xf32>
    %56 = arith.mulf %54, %55 : vector<8x8xf32>
    %cst_36 = arith.constant dense<0xFF800000> : vector<8xf32>
    %57 = vector.multi_reduction <maximumf>, %56, %cst_36 [1] : vector<8x8xf32> to vector<8xf32>
    %58 = vector.shape_cast %57 : vector<8xf32> to vector<8x1xf32>
    %59 = vector.broadcast %58 : vector<8x1xf32> to vector<8x8xf32>
    %60 = arith.subf %56, %59 : vector<8x8xf32>
    %61 = math.exp %60 : vector<8x8xf32>
    %cst_37 = arith.constant dense<0.000000e+00> : vector<8xf32>
    %62 = vector.multi_reduction <add>, %61, %cst_37 [1] : vector<8x8xf32> to vector<8xf32>
    %63 = vector.shape_cast %62 : vector<8xf32> to vector<8x1xf32>
    %64 = vector.broadcast %63 : vector<8x1xf32> to vector<8x8xf32>
    %65 = arith.divf %61, %64 : vector<8x8xf32>
    %66 = vector.extract_strided_slice %12 {offsets = [64, 0], sizes = [32, 32], strides = [1, 1]} : vector<128x32xf32> to vector<32x32xf32>
    %cst_38 = arith.constant dense<0.000000e+00> : vector<8x32xf32>
    %67 = tpu.matmul %3, %66, %cst_38 {dimension_numbers = #tpu.dot_dimension_numbers<[1], [0], [0], [1], [0, 0, 1, 1], [], []>} : vector<8x32xf32>, vector<32x32xf32>, vector<8x32xf32> -> vector<8x32xf32>
    %cst_39 = arith.constant dense<0.000000e+00> : vector<8x32xf32>
    %68 = tpu.matmul %65, %67, %cst_39 {dimension_numbers = #tpu.dot_dimension_numbers<[1], [0], [0], [1], [0, 0, 1, 1], [], []>} : vector<8x8xf32>, vector<8x32xf32>, vector<8x32xf32> -> vector<8x32xf32>
    %69 = arith.addf %51, %68 : vector<8x32xf32>
    %70 = vector.extract_strided_slice %10 {offsets = [96, 0], sizes = [32, 32], strides = [1, 1]} : vector<128x32xf32> to vector<32x32xf32>
    %cst_40 = arith.constant dense<0.000000e+00> : vector<8x32xf32>
    %71 = tpu.matmul %8, %70, %cst_40 {dimension_numbers = #tpu.dot_dimension_numbers<[1], [0], [0], [1], [0, 0, 1, 1], [], []>} : vector<8x32xf32>, vector<32x32xf32>, vector<8x32xf32> -> vector<8x32xf32>
    %cst_41 = arith.constant dense<0.000000e+00> : vector<8x8xf32>
    %72 = tpu.matmul %71, %3, %cst_41 {dimension_numbers = #tpu.dot_dimension_numbers<[1], [1], [0], [0], [0, 0, 1, 0], [], []>} : vector<8x32xf32>, vector<8x32xf32>, vector<8x8xf32> -> vector<8x8xf32>
    %cst_42 = arith.constant 0.353553385 : f32
    %73 = vector.broadcast %cst_42 : f32 to vector<8x8xf32>
    %74 = arith.mulf %72, %73 : vector<8x8xf32>
    %cst_43 = arith.constant dense<0xFF800000> : vector<8xf32>
    %75 = vector.multi_reduction <maximumf>, %74, %cst_43 [1] : vector<8x8xf32> to vector<8xf32>
    %76 = vector.shape_cast %75 : vector<8xf32> to vector<8x1xf32>
    %77 = vector.broadcast %76 : vector<8x1xf32> to vector<8x8xf32>
    %78 = arith.subf %74, %77 : vector<8x8xf32>
    %79 = math.exp %78 : vector<8x8xf32>
    %cst_44 = arith.constant dense<0.000000e+00> : vector<8xf32>
    %80 = vector.multi_reduction <add>, %79, %cst_44 [1] : vector<8x8xf32> to vector<8xf32>
    %81 = vector.shape_cast %80 : vector<8xf32> to vector<8x1xf32>
    %82 = vector.broadcast %81 : vector<8x1xf32> to vector<8x8xf32>
    %83 = arith.divf %79, %82 : vector<8x8xf32>
    %84 = vector.extract_strided_slice %12 {offsets = [96, 0], sizes = [32, 32], strides = [1, 1]} : vector<128x32xf32> to vector<32x32xf32>
    %cst_45 = arith.constant dense<0.000000e+00> : vector<8x32xf32>
    %85 = tpu.matmul %3, %84, %cst_45 {dimension_numbers = #tpu.dot_dimension_numbers<[1], [0], [0], [1], [0, 0, 1, 1], [], []>} : vector<8x32xf32>, vector<32x32xf32>, vector<8x32xf32> -> vector<8x32xf32>
    %cst_46 = arith.constant dense<0.000000e+00> : vector<8x32xf32>
    %86 = tpu.matmul %83, %85, %cst_46 {dimension_numbers = #tpu.dot_dimension_numbers<[1], [0], [0], [1], [0, 0, 1, 1], [], []>} : vector<8x8xf32>, vector<8x32xf32>, vector<8x32xf32> -> vector<8x32xf32>
    %87 = arith.addf %69, %86 : vector<8x32xf32>
    %88 = arith.addf %8, %87 : vector<8x32xf32>
    %89 = vector.extract_strided_slice %14 {offsets = [0, 0], sizes = [1, 32], strides = [1, 1]} : vector<5x32xf32> to vector<1x32xf32>
    %90 = vector.extract_strided_slice %14 {offsets = [1, 0], sizes = [1, 32], strides = [1, 1]} : vector<5x32xf32> to vector<1x32xf32>
    %cst_47 = arith.constant dense<0.000000e+00> : vector<8xf32>
    %91 = vector.multi_reduction <add>, %88, %cst_47 [1] : vector<8x32xf32> to vector<8xf32>
    %92 = vector.shape_cast %91 : vector<8xf32> to vector<8x1xf32>
    %cst_48 = arith.constant 3.200000e+01 : f32
    %93 = vector.broadcast %cst_48 : f32 to vector<8x1xf32>
    %94 = arith.divf %92, %93 : vector<8x1xf32>
    %95 = vector.broadcast %94 : vector<8x1xf32> to vector<8x32xf32>
    %96 = arith.subf %88, %95 : vector<8x32xf32>
    %97 = arith.mulf %96, %96 : vector<8x32xf32>
    %cst_49 = arith.constant dense<0.000000e+00> : vector<8xf32>
    %98 = vector.multi_reduction <add>, %97, %cst_49 [1] : vector<8x32xf32> to vector<8xf32>
    %99 = vector.shape_cast %98 : vector<8xf32> to vector<8x1xf32>
    %cst_50 = arith.constant 3.200000e+01 : f32
    %100 = vector.broadcast %cst_50 : f32 to vector<8x1xf32>
    %101 = arith.divf %99, %100 : vector<8x1xf32>
    %102 = vector.broadcast %94 : vector<8x1xf32> to vector<8x32xf32>
    %103 = arith.subf %88, %102 : vector<8x32xf32>
    %cst_51 = arith.constant 9.99999974E-6 : f32
    %104 = vector.broadcast %cst_51 : f32 to vector<8x1xf32>
    %105 = arith.addf %101, %104 : vector<8x1xf32>
    %106 = math.rsqrt %105 : vector<8x1xf32>
    %107 = vector.broadcast %106 : vector<8x1xf32> to vector<8x32xf32>
    %108 = arith.mulf %103, %107 : vector<8x32xf32>
    %109 = vector.broadcast %89 : vector<1x32xf32> to vector<8x32xf32>
    %110 = arith.mulf %108, %109 : vector<8x32xf32>
    %111 = vector.broadcast %90 : vector<1x32xf32> to vector<8x32xf32>
    %112 = arith.addf %110, %111 : vector<8x32xf32>
    %c0_52 = arith.constant 0 : index
    %c0_53 = arith.constant 0 : index
    %c0_54 = arith.constant 0 : index
    %113 = vector.load %arg7[%c0_52, %c0_53, %c0_54] : memref<2x32x64xf32, #tpu.memory_space<vmem>>, vector<1x32x64xf32>
    %114 = vector.shape_cast %113 : vector<1x32x64xf32> to vector<32x64xf32>
    %cst_55 = arith.constant dense<0.000000e+00> : vector<8x64xf32>
    %115 = tpu.matmul %112, %114, %cst_55 {dimension_numbers = #tpu.dot_dimension_numbers<[1], [0], [0], [1], [0, 0, 1, 1], [], []>} : vector<8x32xf32>, vector<32x64xf32>, vector<8x64xf32> -> vector<8x64xf32>
    %c0_56 = arith.constant 0 : index
    %c0_57 = arith.constant 0 : index
    %c0_58 = arith.constant 0 : index
    %116 = vector.load %arg8[%c0_56, %c0_57, %c0_58] : memref<2x1x64xf32, #tpu.memory_space<vmem>>, vector<1x1x64xf32>
    %117 = vector.shape_cast %116 : vector<1x1x64xf32> to vector<1x64xf32>
    %118 = vector.broadcast %117 : vector<1x64xf32> to vector<8x64xf32>
    %119 = arith.addf %115, %118 : vector<8x64xf32>
    %cst_59 = arith.constant 0.000000e+00 : f32
    %120 = vector.broadcast %cst_59 : f32 to vector<8x64xf32>
    %121 = arith.maximumf %119, %120 : vector<8x64xf32>
    %c0_60 = arith.constant 0 : index
    %c0_61 = arith.constant 0 : index
    %c0_62 = arith.constant 0 : index
    %122 = vector.load %arg9[%c0_60, %c0_61, %c0_62] : memref<2x64x32xf32, #tpu.memory_space<vmem>>, vector<1x64x32xf32>
    %123 = vector.shape_cast %122 : vector<1x64x32xf32> to vector<64x32xf32>
    %cst_63 = arith.constant dense<0.000000e+00> : vector<8x32xf32>
    %124 = tpu.matmul %121, %123, %cst_63 {dimension_numbers = #tpu.dot_dimension_numbers<[1], [0], [0], [1], [0, 0, 1, 1], [], []>} : vector<8x64xf32>, vector<64x32xf32>, vector<8x32xf32> -> vector<8x32xf32>
    %125 = vector.extract_strided_slice %14 {offsets = [4, 0], sizes = [1, 32], strides = [1, 1]} : vector<5x32xf32> to vector<1x32xf32>
    %126 = vector.broadcast %125 : vector<1x32xf32> to vector<8x32xf32>
    %127 = arith.addf %124, %126 : vector<8x32xf32>
    %128 = arith.addf %112, %127 : vector<8x32xf32>
    %129 = vector.extract_strided_slice %14 {offsets = [2, 0], sizes = [1, 32], strides = [1, 1]} : vector<5x32xf32> to vector<1x32xf32>
    %130 = vector.extract_strided_slice %14 {offsets = [3, 0], sizes = [1, 32], strides = [1, 1]} : vector<5x32xf32> to vector<1x32xf32>
    %cst_64 = arith.constant dense<0.000000e+00> : vector<8xf32>
    %131 = vector.multi_reduction <add>, %128, %cst_64 [1] : vector<8x32xf32> to vector<8xf32>
    %132 = vector.shape_cast %131 : vector<8xf32> to vector<8x1xf32>
    %cst_65 = arith.constant 3.200000e+01 : f32
    %133 = vector.broadcast %cst_65 : f32 to vector<8x1xf32>
    %134 = arith.divf %132, %133 : vector<8x1xf32>
    %135 = vector.broadcast %134 : vector<8x1xf32> to vector<8x32xf32>
    %136 = arith.subf %128, %135 : vector<8x32xf32>
    %137 = arith.mulf %136, %136 : vector<8x32xf32>
    %cst_66 = arith.constant dense<0.000000e+00> : vector<8xf32>
    %138 = vector.multi_reduction <add>, %137, %cst_66 [1] : vector<8x32xf32> to vector<8xf32>
    %139 = vector.shape_cast %138 : vector<8xf32> to vector<8x1xf32>
    %cst_67 = arith.constant 3.200000e+01 : f32
    %140 = vector.broadcast %cst_67 : f32 to vector<8x1xf32>
    %141 = arith.divf %139, %140 : vector<8x1xf32>
    %142 = vector.broadcast %134 : vector<8x1xf32> to vector<8x32xf32>
    %143 = arith.subf %128, %142 : vector<8x32xf32>
    %cst_68 = arith.constant 9.99999974E-6 : f32
    %144 = vector.broadcast %cst_68 : f32 to vector<8x1xf32>
    %145 = arith.addf %141, %144 : vector<8x1xf32>
    %146 = math.rsqrt %145 : vector<8x1xf32>
    %147 = vector.broadcast %146 : vector<8x1xf32> to vector<8x32xf32>
    %148 = arith.mulf %143, %147 : vector<8x32xf32>
    %149 = vector.broadcast %129 : vector<1x32xf32> to vector<8x32xf32>
    %150 = arith.mulf %148, %149 : vector<8x32xf32>
    %151 = vector.broadcast %130 : vector<1x32xf32> to vector<8x32xf32>
    %152 = arith.addf %150, %151 : vector<8x32xf32>
    %c1 = arith.constant 1 : index
    %c0_69 = arith.constant 0 : index
    %c0_70 = arith.constant 0 : index
    %153 = vector.load %arg5[%c1, %c0_69, %c0_70] : memref<2x128x32xf32, #tpu.memory_space<vmem>>, vector<1x128x32xf32>
    %154 = vector.shape_cast %153 : vector<1x128x32xf32> to vector<128x32xf32>
    %c1_71 = arith.constant 1 : index
    %c0_72 = arith.constant 0 : index
    %c0_73 = arith.constant 0 : index
    %155 = vector.load %arg6[%c1_71, %c0_72, %c0_73] : memref<2x128x32xf32, #tpu.memory_space<vmem>>, vector<1x128x32xf32>
    %156 = vector.shape_cast %155 : vector<1x128x32xf32> to vector<128x32xf32>
    %c1_74 = arith.constant 1 : index
    %c0_75 = arith.constant 0 : index
    %c0_76 = arith.constant 0 : index
    %157 = vector.load %arg10[%c1_74, %c0_75, %c0_76] : memref<2x5x32xf32, #tpu.memory_space<vmem>>, vector<1x5x32xf32>
    %158 = vector.shape_cast %157 : vector<1x5x32xf32> to vector<5x32xf32>
    %cst_77 = arith.constant 0.000000e+00 : f32
    %159 = vector.broadcast %cst_77 : f32 to vector<8x32xf32>
    %160 = vector.extract_strided_slice %154 {offsets = [0, 0], sizes = [32, 32], strides = [1, 1]} : vector<128x32xf32> to vector<32x32xf32>
    %cst_78 = arith.constant dense<0.000000e+00> : vector<8x32xf32>
    %161 = tpu.matmul %152, %160, %cst_78 {dimension_numbers = #tpu.dot_dimension_numbers<[1], [0], [0], [1], [0, 0, 1, 1], [], []>} : vector<8x32xf32>, vector<32x32xf32>, vector<8x32xf32> -> vector<8x32xf32>
    %cst_79 = arith.constant dense<0.000000e+00> : vector<8x8xf32>
    %162 = tpu.matmul %161, %3, %cst_79 {dimension_numbers = #tpu.dot_dimension_numbers<[1], [1], [0], [0], [0, 0, 1, 0], [], []>} : vector<8x32xf32>, vector<8x32xf32>, vector<8x8xf32> -> vector<8x8xf32>
    %cst_80 = arith.constant 0.353553385 : f32
    %163 = vector.broadcast %cst_80 : f32 to vector<8x8xf32>
    %164 = arith.mulf %162, %163 : vector<8x8xf32>
    %cst_81 = arith.constant dense<0xFF800000> : vector<8xf32>
    %165 = vector.multi_reduction <maximumf>, %164, %cst_81 [1] : vector<8x8xf32> to vector<8xf32>
    %166 = vector.shape_cast %165 : vector<8xf32> to vector<8x1xf32>
    %167 = vector.broadcast %166 : vector<8x1xf32> to vector<8x8xf32>
    %168 = arith.subf %164, %167 : vector<8x8xf32>
    %169 = math.exp %168 : vector<8x8xf32>
    %cst_82 = arith.constant dense<0.000000e+00> : vector<8xf32>
    %170 = vector.multi_reduction <add>, %169, %cst_82 [1] : vector<8x8xf32> to vector<8xf32>
    %171 = vector.shape_cast %170 : vector<8xf32> to vector<8x1xf32>
    %172 = vector.broadcast %171 : vector<8x1xf32> to vector<8x8xf32>
    %173 = arith.divf %169, %172 : vector<8x8xf32>
    %174 = vector.extract_strided_slice %156 {offsets = [0, 0], sizes = [32, 32], strides = [1, 1]} : vector<128x32xf32> to vector<32x32xf32>
    %cst_83 = arith.constant dense<0.000000e+00> : vector<8x32xf32>
    %175 = tpu.matmul %3, %174, %cst_83 {dimension_numbers = #tpu.dot_dimension_numbers<[1], [0], [0], [1], [0, 0, 1, 1], [], []>} : vector<8x32xf32>, vector<32x32xf32>, vector<8x32xf32> -> vector<8x32xf32>
    %cst_84 = arith.constant dense<0.000000e+00> : vector<8x32xf32>
    %176 = tpu.matmul %173, %175, %cst_84 {dimension_numbers = #tpu.dot_dimension_numbers<[1], [0], [0], [1], [0, 0, 1, 1], [], []>} : vector<8x8xf32>, vector<8x32xf32>, vector<8x32xf32> -> vector<8x32xf32>
    %177 = arith.addf %159, %176 : vector<8x32xf32>
    %178 = vector.extract_strided_slice %154 {offsets = [32, 0], sizes = [32, 32], strides = [1, 1]} : vector<128x32xf32> to vector<32x32xf32>
    %cst_85 = arith.constant dense<0.000000e+00> : vector<8x32xf32>
    %179 = tpu.matmul %152, %178, %cst_85 {dimension_numbers = #tpu.dot_dimension_numbers<[1], [0], [0], [1], [0, 0, 1, 1], [], []>} : vector<8x32xf32>, vector<32x32xf32>, vector<8x32xf32> -> vector<8x32xf32>
    %cst_86 = arith.constant dense<0.000000e+00> : vector<8x8xf32>
    %180 = tpu.matmul %179, %3, %cst_86 {dimension_numbers = #tpu.dot_dimension_numbers<[1], [1], [0], [0], [0, 0, 1, 0], [], []>} : vector<8x32xf32>, vector<8x32xf32>, vector<8x8xf32> -> vector<8x8xf32>
    %cst_87 = arith.constant 0.353553385 : f32
    %181 = vector.broadcast %cst_87 : f32 to vector<8x8xf32>
    %182 = arith.mulf %180, %181 : vector<8x8xf32>
    %cst_88 = arith.constant dense<0xFF800000> : vector<8xf32>
    %183 = vector.multi_reduction <maximumf>, %182, %cst_88 [1] : vector<8x8xf32> to vector<8xf32>
    %184 = vector.shape_cast %183 : vector<8xf32> to vector<8x1xf32>
    %185 = vector.broadcast %184 : vector<8x1xf32> to vector<8x8xf32>
    %186 = arith.subf %182, %185 : vector<8x8xf32>
    %187 = math.exp %186 : vector<8x8xf32>
    %cst_89 = arith.constant dense<0.000000e+00> : vector<8xf32>
    %188 = vector.multi_reduction <add>, %187, %cst_89 [1] : vector<8x8xf32> to vector<8xf32>
    %189 = vector.shape_cast %188 : vector<8xf32> to vector<8x1xf32>
    %190 = vector.broadcast %189 : vector<8x1xf32> to vector<8x8xf32>
    %191 = arith.divf %187, %190 : vector<8x8xf32>
    %192 = vector.extract_strided_slice %156 {offsets = [32, 0], sizes = [32, 32], strides = [1, 1]} : vector<128x32xf32> to vector<32x32xf32>
    %cst_90 = arith.constant dense<0.000000e+00> : vector<8x32xf32>
    %193 = tpu.matmul %3, %192, %cst_90 {dimension_numbers = #tpu.dot_dimension_numbers<[1], [0], [0], [1], [0, 0, 1, 1], [], []>} : vector<8x32xf32>, vector<32x32xf32>, vector<8x32xf32> -> vector<8x32xf32>
    %cst_91 = arith.constant dense<0.000000e+00> : vector<8x32xf32>
    %194 = tpu.matmul %191, %193, %cst_91 {dimension_numbers = #tpu.dot_dimension_numbers<[1], [0], [0], [1], [0, 0, 1, 1], [], []>} : vector<8x8xf32>, vector<8x32xf32>, vector<8x32xf32> -> vector<8x32xf32>
    %195 = arith.addf %177, %194 : vector<8x32xf32>
    %196 = vector.extract_strided_slice %154 {offsets = [64, 0], sizes = [32, 32], strides = [1, 1]} : vector<128x32xf32> to vector<32x32xf32>
    %cst_92 = arith.constant dense<0.000000e+00> : vector<8x32xf32>
    %197 = tpu.matmul %152, %196, %cst_92 {dimension_numbers = #tpu.dot_dimension_numbers<[1], [0], [0], [1], [0, 0, 1, 1], [], []>} : vector<8x32xf32>, vector<32x32xf32>, vector<8x32xf32> -> vector<8x32xf32>
    %cst_93 = arith.constant dense<0.000000e+00> : vector<8x8xf32>
    %198 = tpu.matmul %197, %3, %cst_93 {dimension_numbers = #tpu.dot_dimension_numbers<[1], [1], [0], [0], [0, 0, 1, 0], [], []>} : vector<8x32xf32>, vector<8x32xf32>, vector<8x8xf32> -> vector<8x8xf32>
    %cst_94 = arith.constant 0.353553385 : f32
    %199 = vector.broadcast %cst_94 : f32 to vector<8x8xf32>
    %200 = arith.mulf %198, %199 : vector<8x8xf32>
    %cst_95 = arith.constant dense<0xFF800000> : vector<8xf32>
    %201 = vector.multi_reduction <maximumf>, %200, %cst_95 [1] : vector<8x8xf32> to vector<8xf32>
    %202 = vector.shape_cast %201 : vector<8xf32> to vector<8x1xf32>
    %203 = vector.broadcast %202 : vector<8x1xf32> to vector<8x8xf32>
    %204 = arith.subf %200, %203 : vector<8x8xf32>
    %205 = math.exp %204 : vector<8x8xf32>
    %cst_96 = arith.constant dense<0.000000e+00> : vector<8xf32>
    %206 = vector.multi_reduction <add>, %205, %cst_96 [1] : vector<8x8xf32> to vector<8xf32>
    %207 = vector.shape_cast %206 : vector<8xf32> to vector<8x1xf32>
    %208 = vector.broadcast %207 : vector<8x1xf32> to vector<8x8xf32>
    %209 = arith.divf %205, %208 : vector<8x8xf32>
    %210 = vector.extract_strided_slice %156 {offsets = [64, 0], sizes = [32, 32], strides = [1, 1]} : vector<128x32xf32> to vector<32x32xf32>
    %cst_97 = arith.constant dense<0.000000e+00> : vector<8x32xf32>
    %211 = tpu.matmul %3, %210, %cst_97 {dimension_numbers = #tpu.dot_dimension_numbers<[1], [0], [0], [1], [0, 0, 1, 1], [], []>} : vector<8x32xf32>, vector<32x32xf32>, vector<8x32xf32> -> vector<8x32xf32>
    %cst_98 = arith.constant dense<0.000000e+00> : vector<8x32xf32>
    %212 = tpu.matmul %209, %211, %cst_98 {dimension_numbers = #tpu.dot_dimension_numbers<[1], [0], [0], [1], [0, 0, 1, 1], [], []>} : vector<8x8xf32>, vector<8x32xf32>, vector<8x32xf32> -> vector<8x32xf32>
    %213 = arith.addf %195, %212 : vector<8x32xf32>
    %214 = vector.extract_strided_slice %154 {offsets = [96, 0], sizes = [32, 32], strides = [1, 1]} : vector<128x32xf32> to vector<32x32xf32>
    %cst_99 = arith.constant dense<0.000000e+00> : vector<8x32xf32>
    %215 = tpu.matmul %152, %214, %cst_99 {dimension_numbers = #tpu.dot_dimension_numbers<[1], [0], [0], [1], [0, 0, 1, 1], [], []>} : vector<8x32xf32>, vector<32x32xf32>, vector<8x32xf32> -> vector<8x32xf32>
    %cst_100 = arith.constant dense<0.000000e+00> : vector<8x8xf32>
    %216 = tpu.matmul %215, %3, %cst_100 {dimension_numbers = #tpu.dot_dimension_numbers<[1], [1], [0], [0], [0, 0, 1, 0], [], []>} : vector<8x32xf32>, vector<8x32xf32>, vector<8x8xf32> -> vector<8x8xf32>
    %cst_101 = arith.constant 0.353553385 : f32
    %217 = vector.broadcast %cst_101 : f32 to vector<8x8xf32>
    %218 = arith.mulf %216, %217 : vector<8x8xf32>
    %cst_102 = arith.constant dense<0xFF800000> : vector<8xf32>
    %219 = vector.multi_reduction <maximumf>, %218, %cst_102 [1] : vector<8x8xf32> to vector<8xf32>
    %220 = vector.shape_cast %219 : vector<8xf32> to vector<8x1xf32>
    %221 = vector.broadcast %220 : vector<8x1xf32> to vector<8x8xf32>
    %222 = arith.subf %218, %221 : vector<8x8xf32>
    %223 = math.exp %222 : vector<8x8xf32>
    %cst_103 = arith.constant dense<0.000000e+00> : vector<8xf32>
    %224 = vector.multi_reduction <add>, %223, %cst_103 [1] : vector<8x8xf32> to vector<8xf32>
    %225 = vector.shape_cast %224 : vector<8xf32> to vector<8x1xf32>
    %226 = vector.broadcast %225 : vector<8x1xf32> to vector<8x8xf32>
    %227 = arith.divf %223, %226 : vector<8x8xf32>
    %228 = vector.extract_strided_slice %156 {offsets = [96, 0], sizes = [32, 32], strides = [1, 1]} : vector<128x32xf32> to vector<32x32xf32>
    %cst_104 = arith.constant dense<0.000000e+00> : vector<8x32xf32>
    %229 = tpu.matmul %3, %228, %cst_104 {dimension_numbers = #tpu.dot_dimension_numbers<[1], [0], [0], [1], [0, 0, 1, 1], [], []>} : vector<8x32xf32>, vector<32x32xf32>, vector<8x32xf32> -> vector<8x32xf32>
    %cst_105 = arith.constant dense<0.000000e+00> : vector<8x32xf32>
    %230 = tpu.matmul %227, %229, %cst_105 {dimension_numbers = #tpu.dot_dimension_numbers<[1], [0], [0], [1], [0, 0, 1, 1], [], []>} : vector<8x8xf32>, vector<8x32xf32>, vector<8x32xf32> -> vector<8x32xf32>
    %231 = arith.addf %213, %230 : vector<8x32xf32>
    %232 = arith.addf %152, %231 : vector<8x32xf32>
    %233 = vector.extract_strided_slice %158 {offsets = [0, 0], sizes = [1, 32], strides = [1, 1]} : vector<5x32xf32> to vector<1x32xf32>
    %234 = vector.extract_strided_slice %158 {offsets = [1, 0], sizes = [1, 32], strides = [1, 1]} : vector<5x32xf32> to vector<1x32xf32>
    %cst_106 = arith.constant dense<0.000000e+00> : vector<8xf32>
    %235 = vector.multi_reduction <add>, %232, %cst_106 [1] : vector<8x32xf32> to vector<8xf32>
    %236 = vector.shape_cast %235 : vector<8xf32> to vector<8x1xf32>
    %cst_107 = arith.constant 3.200000e+01 : f32
    %237 = vector.broadcast %cst_107 : f32 to vector<8x1xf32>
    %238 = arith.divf %236, %237 : vector<8x1xf32>
    %239 = vector.broadcast %238 : vector<8x1xf32> to vector<8x32xf32>
    %240 = arith.subf %232, %239 : vector<8x32xf32>
    %241 = arith.mulf %240, %240 : vector<8x32xf32>
    %cst_108 = arith.constant dense<0.000000e+00> : vector<8xf32>
    %242 = vector.multi_reduction <add>, %241, %cst_108 [1] : vector<8x32xf32> to vector<8xf32>
    %243 = vector.shape_cast %242 : vector<8xf32> to vector<8x1xf32>
    %cst_109 = arith.constant 3.200000e+01 : f32
    %244 = vector.broadcast %cst_109 : f32 to vector<8x1xf32>
    %245 = arith.divf %243, %244 : vector<8x1xf32>
    %246 = vector.broadcast %238 : vector<8x1xf32> to vector<8x32xf32>
    %247 = arith.subf %232, %246 : vector<8x32xf32>
    %cst_110 = arith.constant 9.99999974E-6 : f32
    %248 = vector.broadcast %cst_110 : f32 to vector<8x1xf32>
    %249 = arith.addf %245, %248 : vector<8x1xf32>
    %250 = math.rsqrt %249 : vector<8x1xf32>
    %251 = vector.broadcast %250 : vector<8x1xf32> to vector<8x32xf32>
    %252 = arith.mulf %247, %251 : vector<8x32xf32>
    %253 = vector.broadcast %233 : vector<1x32xf32> to vector<8x32xf32>
    %254 = arith.mulf %252, %253 : vector<8x32xf32>
    %255 = vector.broadcast %234 : vector<1x32xf32> to vector<8x32xf32>
    %256 = arith.addf %254, %255 : vector<8x32xf32>
    %c1_111 = arith.constant 1 : index
    %c0_112 = arith.constant 0 : index
    %c0_113 = arith.constant 0 : index
    %257 = vector.load %arg7[%c1_111, %c0_112, %c0_113] : memref<2x32x64xf32, #tpu.memory_space<vmem>>, vector<1x32x64xf32>
    %258 = vector.shape_cast %257 : vector<1x32x64xf32> to vector<32x64xf32>
    %cst_114 = arith.constant dense<0.000000e+00> : vector<8x64xf32>
    %259 = tpu.matmul %256, %258, %cst_114 {dimension_numbers = #tpu.dot_dimension_numbers<[1], [0], [0], [1], [0, 0, 1, 1], [], []>} : vector<8x32xf32>, vector<32x64xf32>, vector<8x64xf32> -> vector<8x64xf32>
    %c1_115 = arith.constant 1 : index
    %c0_116 = arith.constant 0 : index
    %c0_117 = arith.constant 0 : index
    %260 = vector.load %arg8[%c1_115, %c0_116, %c0_117] : memref<2x1x64xf32, #tpu.memory_space<vmem>>, vector<1x1x64xf32>
    %261 = vector.shape_cast %260 : vector<1x1x64xf32> to vector<1x64xf32>
    %262 = vector.broadcast %261 : vector<1x64xf32> to vector<8x64xf32>
    %263 = arith.addf %259, %262 : vector<8x64xf32>
    %cst_118 = arith.constant 0.000000e+00 : f32
    %264 = vector.broadcast %cst_118 : f32 to vector<8x64xf32>
    %265 = arith.maximumf %263, %264 : vector<8x64xf32>
    %c1_119 = arith.constant 1 : index
    %c0_120 = arith.constant 0 : index
    %c0_121 = arith.constant 0 : index
    %266 = vector.load %arg9[%c1_119, %c0_120, %c0_121] : memref<2x64x32xf32, #tpu.memory_space<vmem>>, vector<1x64x32xf32>
    %267 = vector.shape_cast %266 : vector<1x64x32xf32> to vector<64x32xf32>
    %cst_122 = arith.constant dense<0.000000e+00> : vector<8x32xf32>
    %268 = tpu.matmul %265, %267, %cst_122 {dimension_numbers = #tpu.dot_dimension_numbers<[1], [0], [0], [1], [0, 0, 1, 1], [], []>} : vector<8x64xf32>, vector<64x32xf32>, vector<8x32xf32> -> vector<8x32xf32>
    %269 = vector.extract_strided_slice %158 {offsets = [4, 0], sizes = [1, 32], strides = [1, 1]} : vector<5x32xf32> to vector<1x32xf32>
    %270 = vector.broadcast %269 : vector<1x32xf32> to vector<8x32xf32>
    %271 = arith.addf %268, %270 : vector<8x32xf32>
    %272 = arith.addf %256, %271 : vector<8x32xf32>
    %273 = vector.extract_strided_slice %158 {offsets = [2, 0], sizes = [1, 32], strides = [1, 1]} : vector<5x32xf32> to vector<1x32xf32>
    %274 = vector.extract_strided_slice %158 {offsets = [3, 0], sizes = [1, 32], strides = [1, 1]} : vector<5x32xf32> to vector<1x32xf32>
    %cst_123 = arith.constant dense<0.000000e+00> : vector<8xf32>
    %275 = vector.multi_reduction <add>, %272, %cst_123 [1] : vector<8x32xf32> to vector<8xf32>
    %276 = vector.shape_cast %275 : vector<8xf32> to vector<8x1xf32>
    %cst_124 = arith.constant 3.200000e+01 : f32
    %277 = vector.broadcast %cst_124 : f32 to vector<8x1xf32>
    %278 = arith.divf %276, %277 : vector<8x1xf32>
    %279 = vector.broadcast %278 : vector<8x1xf32> to vector<8x32xf32>
    %280 = arith.subf %272, %279 : vector<8x32xf32>
    %281 = arith.mulf %280, %280 : vector<8x32xf32>
    %cst_125 = arith.constant dense<0.000000e+00> : vector<8xf32>
    %282 = vector.multi_reduction <add>, %281, %cst_125 [1] : vector<8x32xf32> to vector<8xf32>
    %283 = vector.shape_cast %282 : vector<8xf32> to vector<8x1xf32>
    %cst_126 = arith.constant 3.200000e+01 : f32
    %284 = vector.broadcast %cst_126 : f32 to vector<8x1xf32>
    %285 = arith.divf %283, %284 : vector<8x1xf32>
    %286 = vector.broadcast %278 : vector<8x1xf32> to vector<8x32xf32>
    %287 = arith.subf %272, %286 : vector<8x32xf32>
    %cst_127 = arith.constant 9.99999974E-6 : f32
    %288 = vector.broadcast %cst_127 : f32 to vector<8x1xf32>
    %289 = arith.addf %285, %288 : vector<8x1xf32>
    %290 = math.rsqrt %289 : vector<8x1xf32>
    %291 = vector.broadcast %290 : vector<8x1xf32> to vector<8x32xf32>
    %292 = arith.mulf %287, %291 : vector<8x32xf32>
    %293 = vector.broadcast %273 : vector<1x32xf32> to vector<8x32xf32>
    %294 = arith.mulf %292, %293 : vector<8x32xf32>
    %295 = vector.broadcast %274 : vector<1x32xf32> to vector<8x32xf32>
    %296 = arith.addf %294, %295 : vector<8x32xf32>
    %c0_128 = arith.constant 0 : index
    %c0_129 = arith.constant 0 : index
    %c0_130 = arith.constant 0 : index
    %297 = vector.load %arg11[%c0_128, %c0_129, %c0_130] : memref<1x8x32xf32, #tpu.memory_space<vmem>>, vector<1x8x32xf32>
    %298 = vector.shape_cast %297 : vector<1x8x32xf32> to vector<8x32xf32>
    %299 = vector.shape_cast %296 : vector<8x32xf32> to vector<1x8x32xf32>
    tpu.vector_store %arg11[%c0_128, %c0_129, %c0_130], %299 {strides = array<i32>} : memref<1x8x32xf32, #tpu.memory_space<vmem>>, vector<1x8x32xf32>,
    return
  }
  func.func @transform_0(%arg0: i32) -> (i32, i32, i32) {
    %c0_i32 = arith.constant 0 : i32
    %c0_i32_0 = arith.constant 0 : i32
    %c0_i32_1 = arith.constant 0 : i32
    return %arg0, %c0_i32, %c0_i32_0 : i32, i32, i32
  }
  func.func @transform_1(%arg0: i32) -> (i32, i32, i32) {
    %c0_i32 = arith.constant 0 : i32
    %c0_i32_0 = arith.constant 0 : i32
    %c0_i32_1 = arith.constant 0 : i32
    return %arg0, %c0_i32, %c0_i32_0 : i32, i32, i32
  }
  func.func @transform_2(%arg0: i32) -> (i32, i32) {
    %c0_i32 = arith.constant 0 : i32
    %c0_i32_0 = arith.constant 0 : i32
    %c0_i32_1 = arith.constant 0 : i32
    return %c0_i32, %c0_i32_0 : i32, i32
  }
  func.func @transform_3(%arg0: i32) -> (i32, i32) {
    %c0_i32 = arith.constant 0 : i32
    %c0_i32_0 = arith.constant 0 : i32
    %c0_i32_1 = arith.constant 0 : i32
    return %c0_i32, %c0_i32_0 : i32, i32
  }
  func.func @transform_4(%arg0: i32) -> (i32, i32, i32) {
    %c0_i32 = arith.constant 0 : i32
    %c0_i32_0 = arith.constant 0 : i32
    %c0_i32_1 = arith.constant 0 : i32
    %c0_i32_2 = arith.constant 0 : i32
    return %c0_i32, %c0_i32_0, %c0_i32_1 : i32, i32, i32
  }
  func.func @transform_5(%arg0: i32) -> (i32, i32, i32) {
    %c0_i32 = arith.constant 0 : i32
    %c0_i32_0 = arith.constant 0 : i32
    %c0_i32_1 = arith.constant 0 : i32
    %c0_i32_2 = arith.constant 0 : i32
    return %c0_i32, %c0_i32_0, %c0_i32_1 : i32, i32, i32
  }
  func.func @transform_6(%arg0: i32) -> (i32, i32, i32) {
    %c0_i32 = arith.constant 0 : i32
    %c0_i32_0 = arith.constant 0 : i32
    %c0_i32_1 = arith.constant 0 : i32
    %c0_i32_2 = arith.constant 0 : i32
    return %c0_i32, %c0_i32_0, %c0_i32_1 : i32, i32, i32
  }
  func.func @transform_7(%arg0: i32) -> (i32, i32, i32) {
    %c0_i32 = arith.constant 0 : i32
    %c0_i32_0 = arith.constant 0 : i32
    %c0_i32_1 = arith.constant 0 : i32
    %c0_i32_2 = arith.constant 0 : i32
    return %c0_i32, %c0_i32_0, %c0_i32_1 : i32, i32, i32
  }
  func.func @transform_8(%arg0: i32) -> (i32, i32, i32) {
    %c0_i32 = arith.constant 0 : i32
    %c0_i32_0 = arith.constant 0 : i32
    %c0_i32_1 = arith.constant 0 : i32
    %c0_i32_2 = arith.constant 0 : i32
    return %c0_i32, %c0_i32_0, %c0_i32_1 : i32, i32, i32
  }
  func.func @transform_9(%arg0: i32) -> (i32, i32, i32) {
    %c0_i32 = arith.constant 0 : i32
    %c0_i32_0 = arith.constant 0 : i32
    %c0_i32_1 = arith.constant 0 : i32
    %c0_i32_2 = arith.constant 0 : i32
    return %c0_i32, %c0_i32_0, %c0_i32_1 : i32, i32, i32
  }
  func.func @transform_10(%arg0: i32) -> (i32, i32, i32) {
    %c0_i32 = arith.constant 0 : i32
    %c0_i32_0 = arith.constant 0 : i32
    %c0_i32_1 = arith.constant 0 : i32
    return %arg0, %c0_i32, %c0_i32_0 : i32, i32, i32
  }
}

</mosaic_0001>

<bundles_post_ra>
// kernel: tpu_custom_call.1
= control target key start
LH: loop header
LB: loop body
LE: loop exit
PB: predicated region body
PF: predicated region fallthrough
CT: control target
= control target key end

     0   :  { %s2517_s0 = inlined_call_operand.vmem [shape: f32[2,8,16], index: 0, kind: input, shape index: {}]   ;;  %s2518_s1 = inlined_call_operand.vmem [shape: f32[2,8,32], index: 1, kind: input, shape index: {}]   ;;  %s2519_s2 = inlined_call_operand.vmem [shape: f32[16,32], index: 2, kind: input, shape index: {}]   ;;  %s2520_s3 = inlined_call_operand.vmem [shape: f32[1,32], index: 3, kind: input, shape index: {}]   ;;  %s2521_s4 = inlined_call_operand.vmem [shape: f32[2,128,32], index: 4, kind: input, shape index: {}]   ;;  %s2522_s5 = inlined_call_operand.vmem [shape: f32[2,128,32], index: 5, kind: input, shape index: {}]   ;;  %s2523_s6 = inlined_call_operand.vmem [shape: f32[2,32,64], index: 6, kind: input, shape index: {}]   ;;  %s2524_s7 = inlined_call_operand.vmem [shape: f32[2,1,64], index: 7, kind: input, shape index: {}]   ;;  %s2525_s8 = inlined_call_operand.vmem [shape: f32[2,64,32], index: 8, kind: input, shape index: {}]   ;;  %s2526_s9 = inlined_call_operand.vmem [shape: f32[2,5,32], index: 9, kind: input, shape index: {}]   ;;  %s2527_s10 = inlined_call_operand.hbm [shape: f32[2,8,32], index: 10, kind: output, shape index: {}]  }
   0x1   :  { %2528 = sst [smem:[#allocation5_spill]] %s2519_s2 }
   0x2   :  { %15 = vsyncpa [#allocation3], 0 }
   0x3   :  { %17 = vsyncpa [#allocation3 + $0x1], 0  ;;  %s2018_s13 = smov 0   ;;  %s2020_s14 = smov 0  }
   0x4   :  { %s2022_s15 = smov 0   ;;  %s2024_s16 = smov 0  }
   0x5 LB: > { %s2039_s17 = sadd.s32 4294967295, %s1960_s16   ;;  %s1711_s18 = sadd.s32 4294967294, %s1960_s16   ;;  %s1960_s16 = sphi %s2024_s16, %s2535_s16   ;;  %s1956_s15 = sphi %s2022_s15, %s2534_s15   ;;  %s1952_s14 = sphi %s2020_s14, %s2533_s14   ;;  %s1948_s13 = sphi %s2018_s13, %s2532_s13  }
   0x6   : > { %s2043_s19 = sadd.s32 1, %s1960_s16   ;;  %s250_s20 = sadd.s32 1, %s1956_s15 }
   0x7   : > { %s247_s21 = ssub.s32 %s1960_s16, %s2043_s19  ;;  %p260_p0 = scmp.ne.s32.totalorder %s1956_s15, %s1952_s14 }
   0x8   : > { %p248_p1 = scmp.eq.s32.totalorder %s247_s21, 0  ;;  %p261_p2 = scmp.eq.s32.totalorder %s2039_s17, 1 }
   0x9   : > { %p266_p3 = scmp.ne.s32.totalorder %s1952_s14, %s1948_s13  ;;  %p267_p4 = scmp.eq.s32.totalorder %s1711_s18, 1 }
   0xa   : > { %s2054_s22 = scalar_select %p248_p1, %s1956_s15, %s250_s20  }
   0xb   : > { %p2056_p5 = por %p261_p2, %p260_p0  ;;  %p2060_p6 = por %p267_p4, %p266_p3 }
   0xc   : > { %p1714_p7 = scmp.ge.s32.totalorder %s1960_s16, 1  ;;  %p323_p8 = scmp.lt.s32.totalorder %s1960_s16, 3 }
   0xe   : > { %p324_p9 = pnand %p1714_p7, %p323_p8 }
   0xf   : > { %s2531_s2 = sld [smem:[#allocation5_spill]] (!%p324_p9)  ;;  %p364_p10 = scmp.lt.s32.totalorder (!%p324_p9), %s2039_s17, 1 }
  0x10   : > { %327 = sbr.rel (%p324_p9) target bundleno = 3381 (0xd35), region = 60  ;;  %s361_s11 = sand.u32 (!%p324_p9), 1, %s1952_s14  }
  0x11   : > { %s1715_s12 = sshll.u32 (!%p324_p9), %s361_s11, 3 }
  0x15   : > { %v375_v0 = vld [vmem:[%s2531_s2 + $0x8] sm:$0xff]  ;;  %v374_v1 = vld [vmem:[%s2531_s2] sm:$0xff]  ;;  %v407_v2 = vld [vmem:[%s2521_s4 + $0x18] sm:$0xff]  ;;  %s365_s21 = scalar_select %p364_p10, %s2039_s17, 1  ;;  %vm380_vm0 = vcmask 130048   ;;  %vm437_vm1 = vcmask 261120  }
  0x16   : > { %398 = vmatpush.msra.mxu0 %v375_v0  ;;  %453 = vmatpush.msra.mxu1 %v407_v2  ;;  %v411_v3 = vld [vmem:[%s2521_s4 + $0x38] sm:$0xff]  ;;  %v406_v4 = vld [vmem:[%s2521_s4 + $0x10] sm:$0xff]  ;;  %v405_v7 = vld [vmem:[%s2521_s4 + $0x8] sm:$0xff]  ;;  %vm488_vm2 = vcmask 64512  }
  0x17   : > { %v410_v5 = vld [vmem:[%s2521_s4 + $0x30] sm:$0xff]  ;;  %s1716_s27 = sshll.u32 %s365_s21, 3  ;;  %v409_v8 = vld [vmem:[%s2521_s4 + $0x28] sm:$0xff]  ;;  %v404_v10 = vld [vmem:[%s2521_s4] sm:$0xff]  ;;  %s363_s21 = scalar_lea.vmem [#allocation2], %s1715_s12 }
  0x18   : > { %399 = vmatpush.msra.mxu0 %v374_v1  ;;  %454 = vmatpush.msra.mxu1 %v406_v4  ;;  %s367_s30 = scalar_lea.vmem %s2517_s0, %s1716_s27  ;;  %s371_s18 = scalar_lea.vmem %s2518_s1, %s1716_s27  ;;  %v408_v11 = vld [vmem:[%s2521_s4 + $0x20] sm:$0xff]  ;;  %v415_v15 = vld [vmem:[%s2521_s4 + $0x58] sm:$0xff]  ;;  %v414_v16 = vld [vmem:[%s2521_s4 + $0x50] sm:$0xff] }
  0x19   : > { %v372_v6 = vld [vmem:[%s367_s30] sm:$0xff]  ;;  %v413_v17 = vld [vmem:[%s2521_s4 + $0x48] sm:$0xff]  ;;  %v427_v19 = vld [vmem:[%s2522_s5 + $0x38] sm:$0xff]  ;;  %s1637_s28 = sshll.u32 %s363_s21, 4  ;;  %s1918_s12 = scalar_lea.hbm %s2527_s10, 16  ;;  %s1638_s28 = int_to_ptr.vmem [resolvable:$true] %s1637_s28 }
  0x1a   : > { %545 = vmatpush.msrb.mxu0 %v411_v3  ;;  %v2098_v9 = vld [vmem:[%s371_s18] sm:$0xff]  ;;  %455 = vmatpush.msra.mxu1 %v405_v7  ;;  %v426_v20 = vld [vmem:[%s2522_s5 + $0x30] sm:$0xff]  ;;  %v425_v21 = vld [vmem:[%s2522_s5 + $0x28] sm:$0xff]  ;;  %s1810_s18 = sshll.u32 %s2039_s17, 3  ;;  %s1625_s17 = scalar_lea.sflag [#allocation3], %s361_s11 }
  0x1b   : > { %1718 = vmatmul.msk.f32.vlgmr.msra.gmra.mxu0 %vm380_vm0, %v372_v6  ;;  %1720 = vmatpush.xpose.msk.msra.mxu3 %vm437_vm1, %v2098_v9  ;;  %v1853_v12 = vld [vmem:[%s2520_s3] ss:$0 sm:$0xff]  ;;  %v419_v22 = vld [vmem:[%s2521_s4 + $0x78] sm:$0xff]  ;;  %v418_v25 = vld [vmem:[%s2521_s4 + $0x70] sm:$0xff]  ;;  %s1635_s26 = scalar_lea.hbm %s2527_s10, %s1810_s18 }
  0x1c   : > { %546 = vmatpush.msrb.mxu0 %v410_v5  ;;  %456 = vmatpush.msra.mxu1 %v404_v10  ;;  %v412_v18 = vld [vmem:[%s2521_s4 + $0x40] sm:$0xff]  ;;  %v417_v26 = vld [vmem:[%s2521_s4 + $0x68] sm:$0xff]  ;;  %v423_v37 = vld [vmem:[%s2522_s5 + $0x18] sm:$0xff]  ;;  %s1639_s29 = sshll.u32 %s1635_s26, 4  ;;  %s1640_s29 = int_to_ptr.hbm [resolvable:$true] %s1639_s29 }
  0x1d   : > { %1724 = vmatpush.xpose.msk.msra.mxu2 %vm437_vm1, %v2098_v9  ;;  %v416_v27 = vld [vmem:[%s2521_s4 + $0x60] sm:$0xff]  ;;  %v422_v38 = vld [vmem:[%s2522_s5 + $0x10] sm:$0xff]  ;;  %v421_v39 = vld [vmem:[%s2522_s5 + $0x8] sm:$0xff]  ;;  %s1912_s30 = sshra.s32 %s1640_s29, 4  ;;  %s1913_s30 = int_to_ptr.hbm [resolvable:$true] %s1912_s30 }
  0x1e   : > { %547 = vmatpush.msrb.mxu0 %v409_v8  ;;  %613 = vmatpush.msrb.mxu1 %v427_v19  ;;  %v424_v28 = vld [vmem:[%s2522_s5 + $0x20] sm:$0xff]  ;;  %v431_v58 = vld [vmem:[%s2522_s5 + $0x58] sm:$0xff]  ;;  %v430_v59 = vld [vmem:[%s2522_s5 + $0x50] sm:$0xff]  ;;  %s1914_s2 = scalar_lea.hbm %s1913_s30, 8  ;;  %p1919_p0 = scmp.lt.s32.totalorder %s1913_s30, %s2527_s10 }
  0x1f   : > { %525 = vmatpush.msrb.mxu3 %v423_v37  ;;  %v420_v40 = vld [vmem:[%s2522_s5] sm:$0xff]  ;;  %v429_v60 = vld [vmem:[%s2522_s5 + $0x48] sm:$0xff]  ;;  %p1915_p11 = scmp.ne.s32.totalorder %s1913_s30, %s1914_s2  ;;  %p1920_p1 = scmp.lt.s32.totalorder %s1918_s12, %s1914_s2 }
  0x20   : > { %548 = vmatpush.msrb.mxu0 %v408_v11  ;;  %614 = vmatpush.msrb.mxu1 %v426_v20  ;;  %v428_v61 = vld [vmem:[%s2522_s5 + $0x40] sm:$0xff] }
  0x21   : > { %679 = vmatpush.msrb.mxu2 %v415_v15  ;;  %526 = vmatpush.msrb.mxu3 %v422_v38  ;;  %p1916_p12 = pnand %p1915_p11, %p2056_p5  ;;  %p1921_p2 = por %p1920_p1, %p1919_p0 }
  0x22   : > { %615 = vmatpush.msrb.mxu1 %v425_v21  ;;  %v435_v21 = vld [vmem:[%s2522_s5 + $0x78] sm:$0xff] }
  0x23   : > { %680 = vmatpush.msrb.mxu2 %v414_v16  ;;  %527 = vmatpush.msrb.mxu3 %v421_v39  ;;  %p1917_p13 = pneg %p1916_p12 }
  0x24   : > { %616 = vmatpush.msrb.mxu1 %v424_v28 }
  0x25   : > { %681 = vmatpush.msrb.mxu2 %v413_v17  ;;  %528 = vmatpush.msrb.mxu3 %v420_v40  ;;  %p1922_p3 = pnand %p1921_p2, %p1917_p13 }
  0x27   : > { %682 = vmatpush.msrb.mxu2 %v412_v18 }
  0x98   : > { %v401_v13 = vpop.f32.mrf.mxu0 }
  0x99   : > { %v2113_v14 = vadd.f32 %v1853_v12, %v401_v13 }
  0x9b   : > { %1719 = vmatmul.msk.f32.vlgmr.msra.gmra.mxu1 %vm437_vm1, %v2113_v14  ;;  %1723 = vmatmul.msk.f32.vlgmr.msrb.gmra.mxu0 %vm437_vm1, %v2113_v14 }
  0x9c   : > { %1730 = vmatpush.xpose.msk.msra.mxu1 %vm437_vm1, %v2098_v9 }
  0xa3   : > { %1726 = vmatmul.msk.f32.vlgmr.msrb.gmra.mxu1 %vm437_vm1, %v2098_v9 }
  0xa4   : > { %1735 = vmatpush.xpose.msk.msrb.mxu1 %vm437_vm1, %v2098_v9 }
 0x118   : > { %v458_v23 = vpop.f32.mrf.mxu1  ;;  %v550_v24 = vpop.f32.mrf.mxu0 }
 0x119   : > { %1721 = vmatmul.msk.f32.vlgmr.msra.gmra.mxu3 %vm437_vm1, %v458_v23  ;;  %1725 = vmatmul.msk.f32.vlgmr.msra.gmra.mxu2 %vm437_vm1, %v550_v24  ;;  %v433_v24 = vld [vmem:[%s2522_s5 + $0x68] sm:$0xff] }
 0x11a   : > { %791 = vmatpush.msra.mxu2 %v419_v22  ;;  %v434_v22 = vld [vmem:[%s2522_s5 + $0x70] sm:$0xff] }
 0x11c   : > { %792 = vmatpush.msra.mxu2 %v418_v25  ;;  %v432_v25 = vld [vmem:[%s2522_s5 + $0x60] sm:$0xff] }
 0x11e   : > { %793 = vmatpush.msra.mxu2 %v417_v26 }
 0x120   : > { %794 = vmatpush.msra.mxu2 %v416_v27  ;;  %v618_v41 = vpop.f32.mrf.mxu1 }
 0x121   : > { %1729 = vmatmul.msk.f32.vlgmr.msrb.gmra.mxu2 %vm437_vm1, %v2113_v14  ;;  %639 = vmatpush.msra.mxu3 %v618_v41 }
 0x122   : > { %1722 = vmatmul.msk.f32.vlgmr.msrb.gmra.mxu3 %vm437_vm1, %v2098_v9 }
 0x123   : > { %747 = vmatpush.msrb.mxu3 %v431_v58 }
 0x125   : > { %748 = vmatpush.msrb.mxu3 %v430_v59 }
 0x127   : > { %749 = vmatpush.msrb.mxu3 %v429_v60 }
 0x129   : > { %1734 = vmatmul.msk.f32.vlgmr.msra.gmra.mxu2 %vm437_vm1, %v2113_v14  ;;  %750 = vmatpush.msrb.mxu3 %v428_v61 }
 0x19c   : > { %v484_v29 = vpop.f32.mrf.mxu3  ;;  %v573_v30 = vpop.f32.mrf.mxu2 }
 0x19d   : > { %v487_v31 = vmul.f32 0.35355338, %v484_v29  ;;  %v576_v32 = vmul.f32 0.35355338, %v573_v30 }
 0x19f   : > { %v577_v33 = vsel %vm488_vm2, %v576_v32, -inf  ;;  %v489_v34 = vsel %vm488_vm2, %v487_v31, -inf }
 0x1a0   : > { %578 = vmax.xlane.f32.xlu0 %v577_v33  ;;  %490 = vmax.xlane.f32.xlu1 %v489_v34 }
 0x1a4   : > { %v684_v35 = vpop.f32.mrf.mxu2 }
 0x1a5   : > { %1731 = vmatmul.msk.f32.vlgmr.msra.gmra.mxu1 %vm437_vm1, %v684_v35  ;;  %v530_v2 = vpop.f32.mrf.mxu3 }
 0x1a6   : > { %662 = vmatpush.msra.mxu0 %v530_v2 }
 0x1ac   : > { %v796_v36 = vpop.f32.mrf.mxu2 }
 0x1ad   : > { %1736 = vmatmul.msk.f32.vlgmr.msrb.gmra.mxu1 %vm437_vm1, %v796_v36 }
 0x213   : > { %v579_v42 = vpop.xlane.xlu0 %578  ;;  %v491_v47 = vpop.xlane.xlu1 %490 }
 0x214   : > { %v580_v43 = vsub.f32 %v576_v32, %v579_v42  ;;  %v492_v50 = vsub.f32 %v487_v31, %v491_v47 }
 0x216   : > { %v581_v44 = vmul.f32 1.442695, %v580_v43  ;;  %v493_v52 = vmul.f32 1.442695, %v492_v50 }
 0x218   : > { %1856 = vpow2.f32 %v581_v44 }
 0x219   : > { %1858 = vpow2.f32 %v493_v52 }
 0x21e   : > { %v1857_v45 = vpop.eup %1856 }
 0x21f   : > { %v583_v46 = vsel %vm488_vm2, %v1857_v45, 0.0  ;;  %v2188_v56 = vpop.eup %1858 }
 0x220   : > { %584 = vadd.xlane.f32.xlu0 %v583_v46  ;;  %v495_v57 = vsel %vm488_vm2, %v2188_v56, 0.0 }
 0x222   : > { %v707_v48 = vpop.f32.mrf.mxu1 }
 0x223   : > { %v710_v49 = vmul.f32 0.35355338, %v707_v48 }
 0x225   : > { %v711_v51 = vsel %vm488_vm2, %v710_v49, -inf }
 0x226   : > { %712 = vmax.xlane.f32.xlu1 %v711_v51 }
 0x22a   : > { %v819_v53 = vpop.f32.mrf.mxu1 }
 0x22b   : > { %v822_v54 = vmul.f32 0.35355338, %v819_v53 }
 0x22d   : > { %v823_v55 = vsel %vm488_vm2, %v822_v54, -inf }
 0x22e   : > { %824 = vmax.xlane.f32.xlu2 %v823_v55 }
 0x236   : > { %496 = vadd.xlane.f32.xlu2 %v495_v57 }
 0x293   : > { %v585_v62 = vpop.xlane.xlu0 %584 }
 0x294   : > { %1860 = vrcp.f32 %v585_v62  ;;  %v597_v6 = vand.u32 2147483648, %v585_v62  ;;  %v595_v8 = vand.u32 2147483647, %v585_v62  ;;  %vm591_vm4 = vweird.f32 %v585_v62 }
 0x296   : > { %v598_v12 = vor.u32 1.1754944e-38, %v597_v6  ;;  %vm596_vm6 = vcmp.eq.f32.partialorder %v595_v8, 8.507059e+37 }
 0x299   : > { %v713_v63 = vpop.xlane.xlu1 %712 }
 0x29a   : > { %v1861_v0 = vpop.eup %1860  ;;  %v714_v1 = vsub.f32 %v710_v49, %v713_v63 }
 0x29b   : > { %v587_v3 = vmul.f32 %v1861_v0, %v585_v62  ;;  %vm592_vm3 = vweird.f32 %v1861_v0 }
 0x29c   : > { %v715_v4 = vmul.f32 1.442695, %v714_v1  ;;  %vm593_vm5 = vmor %vm591_vm4, %vm592_vm3 }
 0x29d   : > { %v588_v5 = vsub.f32 1.0, %v587_v3 }
 0x29e   : > { %1862 = vpow2.f32 %v715_v4 }
 0x29f   : > { %v589_v7 = vmul.f32 %v1861_v0, %v588_v5 }
 0x2a1   : > { %v590_v10 = vadd.f32 %v1861_v0, %v589_v7  ;;  %v825_v11 = vpop.xlane.xlu2 %824 }
 0x2a2   : > { %v826_v13 = vsub.f32 %v822_v54, %v825_v11  ;;  %v1962_v11 = vmov 32.0  }
 0x2a3   : > { %v594_v15 = vsel %vm593_vm5, %v1861_v0, %v590_v10 }
 0x2a4   : > { %v2204_v16 = vpop.eup %1862  ;;  %v599_v17 = vsel %vm596_vm6, %v598_v12, %v594_v15  ;;  %v827_v18 = vmul.f32 1.442695, %v826_v13 }
 0x2a5   : > { %v717_v19 = vsel %vm488_vm2, %v2204_v16, 0.0  ;;  %v600_v20 = vmul.f32 %v1857_v45, %v599_v17 }
 0x2a6   : > { %1864 = vpow2.f32 %v827_v18  ;;  %718 = vadd.xlane.f32.xlu0 %v717_v19 }
 0x2a7   : > { %1727 = vmatmul.msk.f32.vlgmr.msra.gmra.mxu3 %vm488_vm2, %v600_v20 }
 0x2a8   : > { %859 = vmatpush.msra.mxu3 %v435_v21 }
 0x2a9   : > { %v497_v23 = vpop.xlane.xlu2 %496 }
 0x2aa   : > { %1866 = vrcp.f32 %v497_v23  ;;  %860 = vmatpush.msra.mxu3 %v434_v22  ;;  %v509_v31 = vand.u32 2147483648, %v497_v23  ;;  %v507_v33 = vand.u32 2147483647, %v497_v23  ;;  %vm503_vm8 = vweird.f32 %v497_v23 }
 0x2ac   : > { %v1865_v26 = vpop.eup %1864  ;;  %861 = vmatpush.msra.mxu3 %v433_v24  ;;  %v510_v35 = vor.u32 1.1754944e-38, %v509_v31  ;;  %vm508_vm10 = vcmp.eq.f32.partialorder %v507_v33, 8.507059e+37  ;;  %v927_v24 = vld [vmem:[%s2523_s6 + $0x10] sm:$0xff] }
 0x2ad   : > { %v829_v27 = vsel %vm488_vm2, %v1865_v26, 0.0 }
 0x2ae   : > { %830 = vadd.xlane.f32.xlu1 %v829_v27  ;;  %862 = vmatpush.msra.mxu3 %v432_v25  ;;  %v926_v25 = vld [vmem:[%s2523_s6 + $0x8] sm:$0xff]  ;;  %v964_v27 = vld [vmem:[%s2525_s8 + $0x38] sm:$0xff] }
 0x2af   : > { %1732 = vmatmul.msk.f32.vlgmr.msrb.gmra.mxu3 %vm437_vm1, %v2098_v9  ;;  %978 = vmatpush.msra.mxu1 %v964_v27  ;;  %v1759_v27 = vld [vmem:[%s2522_s5 + $0x90] sm:$0xff] }
 0x2b0   : > { %v1867_v28 = vpop.eup %1866 }
 0x2b1   : > { %v499_v29 = vmul.f32 %v1867_v28, %v497_v23  ;;  %vm504_vm7 = vweird.f32 %v1867_v28  ;;  %v928_v23 = vld [vmem:[%s2523_s6 + $0x18] sm:$0xff] }
 0x2b2   : > { %vm505_vm9 = vmor %vm503_vm8, %vm504_vm7  ;;  %948 = vmatpush.msrb.mxu2 %v928_v23 }
 0x2b3   : > { %v500_v30 = vsub.f32 1.0, %v499_v29  ;;  %v962_v29 = vld [vmem:[%s2525_s8 + $0x28] sm:$0xff] }
 0x2b4   : > { %949 = vmatpush.msrb.mxu2 %v927_v24 }
 0x2b5   : > { %v501_v32 = vmul.f32 %v1867_v28, %v500_v30 }
 0x2b6   : > { %950 = vmatpush.msrb.mxu2 %v926_v25 }
 0x2b7   : > { %v502_v34 = vadd.f32 %v1867_v28, %v501_v32  ;;  %1737 = vmatmul.msk.f32.vlgmr.msra.gmra.mxu3 %vm437_vm1, %v2098_v9  ;;  %v961_v32 = vld [vmem:[%s2525_s8 + $0x20] sm:$0xff] }
 0x2b9   : > { %v506_v36 = vsel %vm505_vm9, %v1867_v28, %v502_v34  ;;  %v963_v28 = vld [vmem:[%s2525_s8 + $0x30] sm:$0xff]  ;;  %v960_v34 = vld [vmem:[%s2525_s8 + $0x18] sm:$0xff]  ;;  %vm966_vm9 = vcmask 523264  }
 0x2ba   : > { %v511_v37 = vsel %vm508_vm10, %v510_v35, %v506_v36  ;;  %979 = vmatpush.msra.mxu1 %v963_v28  ;;  %v1758_v28 = vld [vmem:[%s2522_s5 + $0x88] sm:$0xff] }
 0x2bb   : > { %v512_v38 = vmul.f32 %v2188_v56, %v511_v37 }
 0x2bc   : > { %980 = vmatpush.msra.mxu1 %v962_v29  ;;  %v1752_v29 = vld [vmem:[%s2521_s4 + $0xd8] sm:$0xff] }
 0x2bd   : > { %1728 = vmatmul.msk.f32.vlgmr.msra.gmra.mxu0 %vm488_vm2, %v512_v38 }
 0x2be   : > { %981 = vmatpush.msra.mxu1 %v961_v32  ;;  %v1750_v32 = vld [vmem:[%s2521_s4 + $0xc8] sm:$0xff] }
 0x2c0   : > { %982 = vmatpush.msra.mxu1 %v960_v34  ;;  %v1756_v34 = vld [vmem:[%s2521_s4 + $0xf8] sm:$0xff] }
 0x319   : > { %v719_v39 = vpop.xlane.xlu0 %718 }
 0x31a   : > { %1868 = vrcp.f32 %v719_v39  ;;  %v731_v47 = vand.u32 2147483648, %v719_v39  ;;  %vm725_vm12 = vweird.f32 %v719_v39  ;;  %v729_v49 = vand.u32 2147483647, %v719_v39 }
 0x31c   : > { %v732_v53 = vor.u32 1.1754944e-38, %v731_v47  ;;  %vm730_vm14 = vcmp.eq.f32.partialorder %v729_v49, 8.507059e+37  ;;  %v958_v49 = vld [vmem:[%s2525_s8 + $0x8] sm:$0xff] }
 0x320   : > { %v1869_v40 = vpop.eup %1868 }
 0x321   : > { %v721_v41 = vmul.f32 %v1869_v40, %v719_v39  ;;  %v831_v42 = vpop.xlane.xlu1 %830  ;;  %vm726_vm11 = vweird.f32 %v1869_v40  ;;  %v2272_v39 = vld [vmem:[%s2526_s9] sm:$0x1f] }
 0x322   : > { %1870 = vrcp.f32 %v831_v42  ;;  %vm727_vm13 = vmor %vm725_vm12, %vm726_vm11  ;;  %v843_v57 = vand.u32 2147483648, %v831_v42  ;;  %vm837_vm0 = vweird.f32 %v831_v42  ;;  %v841_v58 = vand.u32 2147483647, %v831_v42 }
 0x323   : > { %v722_v43 = vsub.f32 1.0, %v721_v41  ;;  %1872 = vrcp.f32 %v1962_v11  ;;  %v1745_v11 = vld [vmem:[%s2521_s4 + $0xa0] sm:$0xff]  ;;  %v1015_v23 = vperm.slane %v2272_v39, 3 }
 0x324   : > { %v844_v62 = vor.u32 1.1754944e-38, %v843_v57  ;;  %vm842_vm4 = vcmp.eq.f32.partialorder %v841_v58, 8.507059e+37 }
 0x325   : > { %v723_v44 = vmul.f32 %v1869_v40, %v722_v43 }
 0x327   : > { %v724_v46 = vadd.f32 %v1869_v40, %v723_v44 }
 0x328   : > { %v1871_v45 = vpop.eup %1870 }
 0x329   : > { %v833_v48 = vmul.f32 %v1871_v45, %v831_v42  ;;  %v728_v52 = vsel %vm727_vm13, %v1869_v40, %v724_v46  ;;  %vm838_vm15 = vweird.f32 %v1871_v45  ;;  %v1873_v12 = vpop.eup %1872  ;;  %v921_v42 = vperm.slane %v2272_v39, 0 }
 0x32a   : > { %v641_v50 = vpop.f32.mrf.mxu3  ;;  %v733_v55 = vsel %vm730_vm14, %v732_v53, %v728_v52  ;;  %vm839_vm3 = vmor %vm837_vm0, %vm838_vm15  ;;  %v896_v13 = vmul.f32 32.0, %v1873_v12  ;;  %vm900_vm5 = vweird.f32 %v1873_v12 }
 0x32b   : > { %v834_v51 = vsub.f32 1.0, %v833_v48  ;;  %v734_v60 = vmul.f32 %v2204_v16, %v733_v55  ;;  %v959_v48 = vld [vmem:[%s2525_s8 + $0x10] sm:$0xff]  ;;  %v965_v55 = vperm.slane %v2272_v39, 4 }
 0x32c   : > { %v897_v15 = vsub.f32 1.0, %v896_v13  ;;  %983 = vmatpush.msra.mxu1 %v959_v48 }
 0x32d   : > { %v835_v54 = vmul.f32 %v1871_v45, %v834_v51  ;;  %v1854_v51 = vld [vmem:[%s2524_s7] ss:$0 sm:$0xff] }
 0x32e   : > { %v898_v16 = vmul.f32 %v1873_v12, %v897_v15  ;;  %984 = vmatpush.msra.mxu1 %v958_v49 }
 0x32f   : > { %v836_v56 = vadd.f32 %v1871_v45, %v835_v54 }
 0x330   : > { %v899_v17 = vadd.f32 %v1873_v12, %v898_v16 }
 0x331   : > { %v840_v61 = vsel %vm839_vm3, %v1871_v45, %v836_v56  ;;  %v923_v45 = vperm.slane %v2272_v39, 1 }
 0x332   : > { %v752_v59 = vpop.f32.mrf.mxu3  ;;  %v845_v63 = vsel %vm842_vm4, %v844_v62, %v840_v61  ;;  %v2237_v18 = vsel %vm900_vm5, %v1873_v12, %v899_v17 }
 0x333   : > { %773 = vmatpush.msrb.mxu0 %v752_v59  ;;  %v846_v1 = vmul.f32 %v1865_v26, %v845_v63  ;;  %v925_v26 = vld [vmem:[%s2523_s6] sm:$0xff] }
 0x334   : > { %1733 = vmatmul.msk.f32.vlgmr.msrb.gmra.mxu0 %vm488_vm2, %v734_v60  ;;  %951 = vmatpush.msrb.mxu2 %v925_v26  ;;  %v1760_v26 = vld [vmem:[%s2522_s5 + $0x98] sm:$0xff] }
 0x336   : > { %1136 = vmatpush.msra.mxu2 %v1760_v26 }
 0x338   : > { %1137 = vmatpush.msra.mxu2 %v1759_v27 }
 0x33a   : > { %v864_v0 = vpop.f32.mrf.mxu3  ;;  %v664_v2 = vpop.f32.mrf.mxu0  ;;  %1138 = vmatpush.msra.mxu2 %v1758_v28 }
 0x33b   : > { %885 = vmatpush.msra.mxu0 %v864_v0  ;;  %v665_v4 = vadd.f32 %v664_v2, %v641_v50  ;;  %v957_v50 = vld [vmem:[%s2525_s8] sm:$0xff]  ;;  %v1743_v2 = vld [vmem:[%s2521_s4 + $0x90] sm:$0xff] }
 0x33c   : > { %1738 = vmatmul.msk.f32.vlgmr.msra.gmra.mxu0 %vm488_vm2, %v846_v1  ;;  %985 = vmatpush.msra.mxu1 %v957_v50  ;;  %v1744_v1 = vld [vmem:[%s2521_s4 + $0x98] sm:$0xff] }
 0x33d   : > { %1775 = vmatpush.xpose.msk.msrb.mxu0 %vm437_vm1, %v2098_v9  ;;  %1068 = vmatpush.msrb.mxu3 %v1744_v1 }
 0x33f   : > { %1069 = vmatpush.msrb.mxu3 %v1743_v2 }
 0x341   : > { %1779 = vmatpush.xpose.msk.msra.mxu0 %vm437_vm1, %v2098_v9 }
 0x3b1   : > { %v775_v3 = vpop.f32.mrf.mxu0 }
 0x3b2   : > { %v778_v5 = vadd.f32 %v775_v3, %v665_v4  ;;  %v1742_v3 = vld [vmem:[%s2521_s4 + $0x88] sm:$0xff]  ;;  %v1741_v4 = vld [vmem:[%s2521_s4 + $0x80] sm:$0xff] }
 0x3b3   : > { %1070 = vmatpush.msrb.mxu3 %v1742_v3 }
 0x3b5   : > { %1071 = vmatpush.msrb.mxu3 %v1741_v4 }
 0x3b9   : > { %v887_v6 = vpop.f32.mrf.mxu0 }
 0x3ba   : > { %v890_v7 = vadd.f32 %v887_v6, %v778_v5  ;;  %v1748_v5 = vld [vmem:[%s2521_s4 + $0xb8] sm:$0xff]  ;;  %v1747_v6 = vld [vmem:[%s2521_s4 + $0xb0] sm:$0xff] }
 0x3bb   : > { %1156 = vmatpush.msra.mxu3 %v1748_v5 }
 0x3bc   : > { %v891_v8 = vadd.f32 %v890_v7, %v2113_v14  ;;  %v1746_v7 = vld [vmem:[%s2521_s4 + $0xa8] sm:$0xff] }
 0x3bd   : > { %1157 = vmatpush.msra.mxu3 %v1747_v6 }
 0x3be   : > { %v892_v10 = vsel %vm437_vm1, %v891_v8, 0.0 }
 0x3bf   : > { %893 = vadd.xlane.f32.xlu2 %v892_v10  ;;  %1158 = vmatpush.msra.mxu3 %v1746_v7  ;;  %v1768_v7 = vld [vmem:[%s2522_s5 + $0xd8] sm:$0xff] }
 0x3c1   : > { %1159 = vmatpush.msra.mxu3 %v1745_v11  ;;  %v1765_v11 = vld [vmem:[%s2522_s5 + $0xc0] sm:$0xff] }
 0x432   : > { %v894_v19 = vpop.xlane.xlu2 %893 }
 0x433   : > { %v902_v20 = vmul.f32 %v2237_v18, %v894_v19 }
 0x435   : > { %v903_v21 = vsub.f32 %v891_v8, %v902_v20 }
 0x437   : > { %v904_v22 = vmul.f32 %v903_v21, %v903_v21 }
 0x439   : > { %v905_v14 = vsel %vm437_vm1, %v904_v22, 0.0 }
 0x43a   : > { %906 = vadd.xlane.f32.xlu0 %v905_v14 }
 0x4ad   : > { %v907_v30 = vpop.xlane.xlu0 %906 }
 0x4ae   : > { %v908_v31 = vmul.f32 %v907_v30, %v2237_v18 }
 0x4b0   : > { %v909_v33 = vadd.f32 1e-05, %v908_v31  ;;  %v1751_v31 = vld [vmem:[%s2521_s4 + $0xd0] sm:$0xff] }
 0x4b2   : > { %1874 = vrsqrt.f32 %v909_v33  ;;  %vm916_vm7 = vweird.f32 %v909_v33 }
 0x4b8   : > { %v1875_v35 = vpop.eup %1874 }
 0x4b9   : > { %v911_v36 = vmul.f32 %v1875_v35, %v909_v33  ;;  %vm917_vm6 = vweird.f32 %v1875_v35  ;;  %v1749_v33 = vld [vmem:[%s2521_s4 + $0xc0] sm:$0xff] }
 0x4ba   : > { %vm918_vm8 = vmor %vm916_vm7, %vm917_vm6 }
 0x4bb   : > { %v912_v37 = vmul.f32 %v1875_v35, %v911_v36  ;;  %v1755_v36 = vld [vmem:[%s2521_s4 + $0xf0] sm:$0xff] }
 0x4bd   : > { %v913_v38 = vmul.f32 0.5, %v912_v37  ;;  %v1754_v37 = vld [vmem:[%s2521_s4 + $0xe8] sm:$0xff] }
 0x4bf   : > { %v914_v40 = vsub.f32 1.5, %v913_v38  ;;  %v1753_v38 = vld [vmem:[%s2521_s4 + $0xe0] sm:$0xff] }
 0x4c1   : > { %v915_v41 = vmul.f32 %v1875_v35, %v914_v40  ;;  %v1764_v40 = vld [vmem:[%s2522_s5 + $0xb8] sm:$0xff] }
 0x4c3   : > { %v919_v43 = vsel %vm918_vm8, %v1875_v35, %v915_v41  ;;  %v1763_v41 = vld [vmem:[%s2522_s5 + $0xb0] sm:$0xff] }
 0x4c4   : > { %v920_v44 = vmul.f32 %v919_v43, %v903_v21  ;;  %v1013_v21 = vperm.slane %v2272_v39, 2  ;;  %v1757_v39 = vld [vmem:[%s2522_s5 + $0x80] sm:$0xff] }
 0x4c5   : > { %1139 = vmatpush.msra.mxu2 %v1757_v39  ;;  %v1761_v43 = vld [vmem:[%s2522_s5 + $0xa0] sm:$0xff] }
 0x4c6   : > { %v922_v46 = vmul.f32 %v921_v42, %v920_v44  ;;  %v1762_v42 = vld [vmem:[%s2522_s5 + $0xa8] sm:$0xff] }
 0x4c8   : > { %v924_v47 = vadd.f32 %v923_v45, %v922_v46 }
 0x4ca   : > { %1739 = vmatmul.msk.f32.vlgmr.msrb.gmra.mxu2 %vm437_vm1, %v924_v47 }
 0x4cb   : > { %1224 = vmatpush.msrb.mxu2 %v1764_v40  ;;  %v1772_v40 = vld [vmem:[%s2522_s5 + $0xf8] sm:$0xff] }
 0x4cd   : > { %1225 = vmatpush.msrb.mxu2 %v1763_v41 }
 0x4cf   : > { %1226 = vmatpush.msrb.mxu2 %v1762_v42  ;;  %v1771_v42 = vld [vmem:[%s2522_s5 + $0xf0] sm:$0xff] }
 0x4d1   : > { %1227 = vmatpush.msrb.mxu2 %v1761_v43 }
 0x4d2   : > { %1777 = vmatmul.msk.f32.vlgmr.msra.gmra.mxu2 %vm437_vm1, %v2098_v9 }
 0x4d3   : > { %1785 = vmatpush.xpose.msk.msra.mxu2 %vm437_vm1, %v2098_v9 }
 0x4da   : > { %1781 = vmatmul.msk.f32.vlgmr.msrb.gmra.mxu2 %vm437_vm1, %v2098_v9 }
 0x4db   : > { %1790 = vmatpush.xpose.msk.msrb.mxu2 %vm437_vm1, %v2098_v9 }
 0x54d   : > { %v953_v52 = vpop.f32.mrf.mxu2 }
 0x54e   : > { %v954_v53 = vadd.f32 %v1854_v51, %v953_v52 }
 0x550   : > { %v956_v54 = vmax.f32 %v954_v53, 0.0 }
 0x552   : > { %1740 = vmatmul.msk.f32.vlgmr.msra.gmra.mxu1 %vm966_vm9, %v956_v54 }
 0x555   : > { %v1141_v52 = vpop.f32.mrf.mxu2 }
 0x55d   : > { %v1229_v53 = vpop.f32.mrf.mxu2 }
 0x55e   : > { %1250 = vmatpush.msrb.mxu1 %v1229_v53 }
 0x560   : > { %1358 = vmatpush.msra.mxu1 %v1768_v7 }
 0x5cf   : > { %v987_v56 = vpop.f32.mrf.mxu1 }
 0x5d0   : > { %v988_v57 = vadd.f32 %v987_v56, %v965_v55 }
 0x5d2   : > { %v990_v58 = vadd.f32 %v988_v57, %v924_v47 }
 0x5d4   : > { %v991_v59 = vsel %vm437_vm1, %v990_v58, 0.0 }
 0x5d5   : > { %992 = vadd.xlane.f32.xlu1 %v991_v59 }
 0x648   : > { %v993_v60 = vpop.xlane.xlu1 %992 }
 0x649   : > { %v994_v61 = vmul.f32 %v993_v60, %v2237_v18 }
 0x64b   : > { %v995_v62 = vsub.f32 %v990_v58, %v994_v61 }
 0x64d   : > { %v996_v63 = vmul.f32 %v995_v62, %v995_v62 }
 0x64f   : > { %v997_v0 = vsel %vm437_vm1, %v996_v63, 0.0 }
 0x650   : > { %998 = vadd.xlane.f32.xlu2 %v997_v0 }
 0x6c3   : > { %v999_v8 = vpop.xlane.xlu2 %998 }
 0x6c4   : > { %v1000_v10 = vmul.f32 %v999_v8, %v2237_v18  ;;  %v1767_v8 = vld [vmem:[%s2522_s5 + $0xd0] sm:$0xff] }
 0x6c5   : > { %1359 = vmatpush.msra.mxu1 %v1767_v8 }
 0x6c6   : > { %v1001_v12 = vadd.f32 1e-05, %v1000_v10  ;;  %v1766_v10 = vld [vmem:[%s2522_s5 + $0xc8] sm:$0xff] }
 0x6c7   : > { %1360 = vmatpush.msra.mxu1 %v1766_v10 }
 0x6c8   : > { %1876 = vrsqrt.f32 %v1001_v12  ;;  %vm1008_vm11 = vweird.f32 %v1001_v12 }
 0x6c9   : > { %1361 = vmatpush.msra.mxu1 %v1765_v11 }
 0x6ce   : > { %v1877_v13 = vpop.eup %1876 }
 0x6cf   : > { %v1003_v15 = vmul.f32 %v1877_v13, %v1001_v12  ;;  %vm1009_vm10 = vweird.f32 %v1877_v13 }
 0x6d0   : > { %vm1010_vm12 = vmor %vm1008_vm11, %vm1009_vm10 }
 0x6d1   : > { %v1004_v16 = vmul.f32 %v1877_v13, %v1003_v15 }
 0x6d3   : > { %v1005_v17 = vmul.f32 0.5, %v1004_v16 }
 0x6d5   : > { %v1006_v19 = vsub.f32 1.5, %v1005_v17 }
 0x6d7   : > { %v1007_v20 = vmul.f32 %v1877_v13, %v1006_v19 }
 0x6d9   : > { %v1011_v22 = vsel %vm1010_vm12, %v1877_v13, %v1007_v20 }
 0x6da   : > { %v1012_v14 = vmul.f32 %v1011_v22, %v995_v62 }
 0x6dc   : > { %v1014_v24 = vmul.f32 %v1013_v21, %v1012_v14 }
 0x6de   : > { %v2321_v25 = vadd.f32 %v1015_v23, %v1014_v24 }
 0x6e0   : > { %1774 = vmatmul.msk.f32.vlgmr.msrb.gmra.mxu3 %vm437_vm1, %v2321_v25 }
 0x6e1   : > { %1273 = vmatpush.msrb.mxu3 %v1141_v52 }
 0x6e8   : > { %1778 = vmatmul.msk.f32.vlgmr.msra.gmra.mxu3 %vm437_vm1, %v2321_v25 }
 0x763   : > { %v1073_v30 = vpop.f32.mrf.mxu3 }
 0x764   : > { %1776 = vmatmul.msk.f32.vlgmr.msrb.gmra.mxu0 %vm437_vm1, %v1073_v30 }
 0x765   : > { %1290 = vmatpush.msrb.mxu0 %v1752_v29 }
 0x767   : > { %1291 = vmatpush.msrb.mxu0 %v1751_v31 }
 0x769   : > { %1292 = vmatpush.msrb.mxu0 %v1750_v32 }
 0x76b   : > { %v1161_v35 = vpop.f32.mrf.mxu3  ;;  %1293 = vmatpush.msrb.mxu0 %v1749_v33 }
 0x76c   : > { %1780 = vmatmul.msk.f32.vlgmr.msra.gmra.mxu0 %vm437_vm1, %v1161_v35 }
 0x76d   : > { %1402 = vmatpush.msra.mxu0 %v1756_v34 }
 0x76f   : > { %1403 = vmatpush.msra.mxu0 %v1755_v36 }
 0x771   : > { %1404 = vmatpush.msra.mxu0 %v1754_v37 }
 0x773   : > { %1405 = vmatpush.msra.mxu0 %v1753_v38 }
 0x774   : > { %1784 = vmatmul.msk.f32.vlgmr.msrb.gmra.mxu0 %vm437_vm1, %v2321_v25 }
 0x77c   : > { %1789 = vmatmul.msk.f32.vlgmr.msra.gmra.mxu0 %vm437_vm1, %v2321_v25 }
 0x7e1   : > { %v1096_v44 = vpop.f32.mrf.mxu0 }
 0x7e2   : > { %v1099_v45 = vmul.f32 0.35355338, %v1096_v44  ;;  %v1770_v44 = vld [vmem:[%s2522_s5 + $0xe8] sm:$0xff] }
 0x7e4   : > { %v1100_v46 = vsel %vm488_vm2, %v1099_v45, -inf }
 0x7e5   : > { %1101 = vmax.xlane.f32.xlu2 %v1100_v46 }
 0x7e9   : > { %v1184_v47 = vpop.f32.mrf.mxu0 }
 0x7ea   : > { %v1187_v48 = vmul.f32 0.35355338, %v1184_v47 }
 0x7ec   : > { %v1188_v49 = vsel %vm488_vm2, %v1187_v48, -inf }
 0x7ed   : > { %1189 = vmax.xlane.f32.xlu0 %v1188_v49 }
 0x7f1   : > { %v1295_v50 = vpop.f32.mrf.mxu0 }
 0x7f2   : > { %1786 = vmatmul.msk.f32.vlgmr.msra.gmra.mxu2 %vm437_vm1, %v1295_v50 }
 0x7f9   : > { %v1407_v51 = vpop.f32.mrf.mxu0 }
 0x7fa   : > { %1791 = vmatmul.msk.f32.vlgmr.msrb.gmra.mxu2 %vm437_vm1, %v1407_v51 }
 0x858   : > { %v1102_v54 = vpop.xlane.xlu2 %1101 }
 0x859   : > { %v1103_v55 = vsub.f32 %v1099_v45, %v1102_v54 }
 0x85b   : > { %v1104_v56 = vmul.f32 1.442695, %v1103_v55 }
 0x85d   : > { %1878 = vpow2.f32 %v1104_v56 }
 0x860   : > { %v1190_v57 = vpop.xlane.xlu0 %1189 }
 0x861   : > { %v1191_v58 = vsub.f32 %v1187_v48, %v1190_v57  ;;  %v1769_v48 = vld [vmem:[%s2522_s5 + $0xe0] sm:$0xff] }
 0x863   : > { %v1879_v59 = vpop.eup %1878  ;;  %v1192_v60 = vmul.f32 1.442695, %v1191_v58 }
 0x864   : > { %v1106_v61 = vsel %vm488_vm2, %v1879_v59, 0.0 }
 0x865   : > { %1880 = vpow2.f32 %v1192_v60  ;;  %1107 = vadd.xlane.f32.xlu2 %v1106_v61 }
 0x86b   : > { %v1881_v62 = vpop.eup %1880 }
 0x86c   : > { %v1194_v63 = vsel %vm488_vm2, %v1881_v62, 0.0 }
 0x86d   : > { %1195 = vadd.xlane.f32.xlu1 %v1194_v63 }
 0x875   : > { %v1318_v0 = vpop.f32.mrf.mxu2 }
 0x876   : > { %v1321_v1 = vmul.f32 0.35355338, %v1318_v0 }
 0x878   : > { %v1322_v2 = vsel %vm488_vm2, %v1321_v1, -inf }
 0x879   : > { %1323 = vmax.xlane.f32.xlu0 %v1322_v2 }
 0x87d   : > { %v1430_v3 = vpop.f32.mrf.mxu2 }
 0x87e   : > { %v1433_v4 = vmul.f32 0.35355338, %v1430_v3 }
 0x880   : > { %v1434_v5 = vsel %vm488_vm2, %v1433_v4, -inf }
 0x881   : > { %1435 = vmax.xlane.f32.xlu1 %v1434_v5 }
 0x8d8   : > { %v1108_v6 = vpop.xlane.xlu2 %1107 }
 0x8d9   : > { %1882 = vrcp.f32 %v1108_v6  ;;  %v1120_v17 = vand.u32 2147483648, %v1108_v6  ;;  %v1118_v20 = vand.u32 2147483647, %v1108_v6  ;;  %vm1114_vm14 = vweird.f32 %v1108_v6 }
 0x8db   : > { %v1121_v14 = vor.u32 1.1754944e-38, %v1120_v17  ;;  %vm1119_vm0 = vcmp.eq.f32.partialorder %v1118_v20, 8.507059e+37 }
 0x8df   : > { %v1883_v12 = vpop.eup %1882 }
 0x8e0   : > { %v1110_v13 = vmul.f32 %v1883_v12, %v1108_v6  ;;  %v1196_v15 = vpop.xlane.xlu1 %1195  ;;  %vm1115_vm13 = vweird.f32 %v1883_v12 }
 0x8e1   : > { %1884 = vrcp.f32 %v1196_v15  ;;  %vm1116_vm15 = vmor %vm1114_vm14, %vm1115_vm13  ;;  %v1208_v29 = vand.u32 2147483648, %v1196_v15  ;;  %v1206_v31 = vand.u32 2147483647, %v1196_v15  ;;  %vm1202_vm4 = vweird.f32 %v1196_v15 }
 0x8e2   : > { %v1111_v16 = vsub.f32 1.0, %v1110_v13 }
 0x8e3   : > { %v1209_v35 = vor.u32 1.1754944e-38, %v1208_v29  ;;  %vm1207_vm6 = vcmp.eq.f32.partialorder %v1206_v31, 8.507059e+37  ;;  %v1797_v29 = vld [vmem:[%s2523_s6 + $0x38] sm:$0xff]  ;;  %v1794_v31 = vld [vmem:[%s2523_s6 + $0x20] sm:$0xff] }
 0x8e4   : > { %v1112_v19 = vmul.f32 %v1883_v12, %v1111_v16  ;;  %1554 = vmatpush.msrb.mxu0 %v1797_v29 }
 0x8e6   : > { %v1113_v21 = vadd.f32 %v1883_v12, %v1112_v19 }
 0x8e7   : > { %v1885_v22 = vpop.eup %1884 }
 0x8e8   : > { %v1117_v23 = vsel %vm1116_vm15, %v1883_v12, %v1113_v21  ;;  %v1198_v24 = vmul.f32 %v1885_v22, %v1196_v15  ;;  %vm1203_vm3 = vweird.f32 %v1885_v22 }
 0x8e9   : > { %v1122_v26 = vsel %vm1119_vm0, %v1121_v14, %v1117_v23  ;;  %vm1204_vm5 = vmor %vm1202_vm4, %vm1203_vm3 }
 0x8ea   : > { %v1199_v27 = vsub.f32 1.0, %v1198_v24  ;;  %v1123_v28 = vmul.f32 %v1879_v59, %v1122_v26 }
 0x8ec   : > { %v1200_v30 = vmul.f32 %v1885_v22, %v1199_v27  ;;  %v1324_v32 = vpop.xlane.xlu0 %1323  ;;  %1783 = vmatmul.msk.f32.vlgmr.msrb.gmra.mxu3 %vm488_vm2, %v1123_v28 }
 0x8ed   : > { %v1325_v33 = vsub.f32 %v1321_v1, %v1324_v32  ;;  %v1807_v32 = vld [vmem:[%s2525_s8 + $0x78] sm:$0xff] }
 0x8ee   : > { %v1201_v34 = vadd.f32 %v1885_v22, %v1200_v30  ;;  %v1795_v30 = vld [vmem:[%s2523_s6 + $0x28] sm:$0xff]  ;;  %1584 = vmatpush.msra.mxu2 %v1807_v32 }
 0x8ef   : > { %v1326_v36 = vmul.f32 1.442695, %v1325_v33  ;;  %v1806_v33 = vld [vmem:[%s2525_s8 + $0x70] sm:$0xff] }
 0x8f0   : > { %v1205_v37 = vsel %vm1204_vm5, %v1885_v22, %v1201_v34  ;;  %v1805_v34 = vld [vmem:[%s2525_s8 + $0x68] sm:$0xff]  ;;  %1585 = vmatpush.msra.mxu2 %v1806_v33 }
 0x8f1   : > { %v1210_v38 = vsel %vm1207_vm6, %v1209_v35, %v1205_v37  ;;  %1886 = vpow2.f32 %v1326_v36  ;;  %v1804_v37 = vld [vmem:[%s2525_s8 + $0x60] sm:$0xff] }
 0x8f2   : > { %v1211_v39 = vmul.f32 %v1881_v62, %v1210_v38  ;;  %1586 = vmatpush.msra.mxu2 %v1805_v34 }
 0x8f4   : > { %1782 = vmatmul.msk.f32.vlgmr.msrb.gmra.mxu1 %vm488_vm2, %v1211_v39  ;;  %v1436_v41 = vpop.xlane.xlu1 %1435  ;;  %v1803_v39 = vld [vmem:[%s2525_s8 + $0x58] sm:$0xff]  ;;  %1587 = vmatpush.msra.mxu2 %v1804_v37 }
 0x8f5   : > { %v1437_v43 = vsub.f32 %v1433_v4, %v1436_v41  ;;  %1470 = vmatpush.msrb.mxu1 %v1772_v40 }
 0x8f6   : > { %1588 = vmatpush.msra.mxu2 %v1803_v39 }
 0x8f7   : > { %v1887_v45 = vpop.eup %1886  ;;  %v1438_v46 = vmul.f32 1.442695, %v1437_v43  ;;  %1471 = vmatpush.msrb.mxu1 %v1771_v42 }
 0x8f8   : > { %v1328_v47 = vsel %vm488_vm2, %v1887_v45, 0.0 }
 0x8f9   : > { %1888 = vpow2.f32 %v1438_v46  ;;  %1329 = vadd.xlane.f32.xlu0 %v1328_v47  ;;  %1472 = vmatpush.msrb.mxu1 %v1770_v44  ;;  %v1773_v44 = vld [vmem:[%s2526_s9 + $0x8] sm:$0x1f] }
 0x8fa   : > { %v1525_v47 = vperm.slane %v1773_v44, 0 }
 0x8fb   : > { %1473 = vmatpush.msrb.mxu1 %v1769_v48 }
 0x8fc   : > { %1787 = vmatmul.msk.f32.vlgmr.msra.gmra.mxu1 %vm437_vm1, %v2098_v9 }
 0x8ff   : > { %v1889_v49 = vpop.eup %1888 }
 0x900   : > { %v1440_v50 = vsel %vm488_vm2, %v1889_v49, 0.0 }
 0x901   : > { %1441 = vadd.xlane.f32.xlu1 %v1440_v50  ;;  %v1527_v50 = vperm.slane %v1773_v44, 1 }
 0x904   : > { %1792 = vmatmul.msk.f32.vlgmr.msrb.gmra.mxu1 %vm437_vm1, %v2098_v9 }
 0x96c   : > { %v1330_v51 = vpop.xlane.xlu0 %1329 }
 0x96d   : > { %1890 = vrcp.f32 %v1330_v51  ;;  %v1342_v57 = vand.u32 2147483648, %v1330_v51  ;;  %v1340_v59 = vand.u32 2147483647, %v1330_v51  ;;  %vm1336_vm8 = vweird.f32 %v1330_v51 }
 0x96f   : > { %v1343_v63 = vor.u32 1.1754944e-38, %v1342_v57  ;;  %vm1341_vm11 = vcmp.eq.f32.partialorder %v1340_v59, 8.507059e+37  ;;  %v1275_v15 = vpop.f32.mrf.mxu3 }
 0x971   : > { %v1252_v52 = vpop.f32.mrf.mxu1 }
 0x972   : > { %v1276_v17 = vadd.f32 %v1275_v15, %v1252_v52 }
 0x973   : > { %v1891_v53 = vpop.eup %1890 }
 0x974   : > { %v1332_v54 = vmul.f32 %v1891_v53, %v1330_v51  ;;  %v1442_v55 = vpop.xlane.xlu1 %1441  ;;  %vm1337_vm7 = vweird.f32 %v1891_v53 }
 0x975   : > { %1892 = vrcp.f32 %v1442_v55  ;;  %vm1338_vm10 = vmor %vm1336_vm8, %vm1337_vm7  ;;  %v1454_v4 = vand.u32 2147483648, %v1442_v55  ;;  %v1452_v6 = vand.u32 2147483647, %v1442_v55  ;;  %vm1448_vm13 = vweird.f32 %v1442_v55 }
 0x976   : > { %v1333_v56 = vsub.f32 1.0, %v1332_v54  ;;  %v1801_v54 = vld [vmem:[%s2525_s8 + $0x48] sm:$0xff] }
 0x977   : > { %v1455_v10 = vor.u32 1.1754944e-38, %v1454_v4  ;;  %vm1453_vm15 = vcmp.eq.f32.partialorder %v1452_v6, 8.507059e+37 }
 0x978   : > { %v1334_v58 = vmul.f32 %v1891_v53, %v1333_v56  ;;  %v1855_v56 = vld [vmem:[%s2524_s7 + $0x1] ss:$0 sm:$0xff] }
 0x979   : > { %v1363_v60 = vpop.f32.mrf.mxu1 }
 0x97a   : > { %v1335_v61 = vadd.f32 %v1891_v53, %v1334_v58  ;;  %1384 = vmatpush.msra.mxu3 %v1363_v60  ;;  %v1572_v60 = vperm.slane %v1773_v44, 4 }
 0x97b   : > { %v1893_v62 = vpop.eup %1892 }
 0x97c   : > { %v1339_v9 = vsel %vm1338_vm10, %v1891_v53, %v1335_v61  ;;  %v1444_v0 = vmul.f32 %v1893_v62, %v1442_v55  ;;  %vm1449_vm12 = vweird.f32 %v1893_v62  ;;  %v1802_v53 = vld [vmem:[%s2525_s8 + $0x50] sm:$0xff]  ;;  %v1800_v55 = vld [vmem:[%s2525_s8 + $0x40] sm:$0xff] }
 0x97d   : > { %v1344_v1 = vsel %vm1341_vm11, %v1343_v63, %v1339_v9  ;;  %vm1450_vm14 = vmor %vm1448_vm13, %vm1449_vm12  ;;  %1589 = vmatpush.msra.mxu2 %v1802_v53 }
 0x97e   : > { %v1445_v2 = vsub.f32 1.0, %v1444_v0  ;;  %v1345_v3 = vmul.f32 %v1887_v45, %v1344_v1 }
 0x97f   : > { %1590 = vmatpush.msra.mxu2 %v1801_v54 }
 0x980   : > { %v1446_v5 = vmul.f32 %v1893_v62, %v1445_v2  ;;  %1788 = vmatmul.msk.f32.vlgmr.msra.gmra.mxu3 %vm488_vm2, %v1345_v3 }
 0x981   : > { %v1475_v7 = vpop.f32.mrf.mxu1  ;;  %1591 = vmatpush.msra.mxu2 %v1800_v55 }
 0x982   : > { %v1447_v8 = vadd.f32 %v1893_v62, %v1446_v5  ;;  %1496 = vmatpush.msrb.mxu3 %v1475_v7 }
 0x984   : > { %v1451_v11 = vsel %vm1450_vm14, %v1893_v62, %v1447_v8 }
 0x985   : > { %v1456_v12 = vsel %vm1453_vm15, %v1455_v10, %v1451_v11 }
 0x986   : > { %v1457_v13 = vmul.f32 %v1889_v49, %v1456_v12 }
 0x988   : > { %1793 = vmatmul.msk.f32.vlgmr.msrb.gmra.mxu3 %vm488_vm2, %v1457_v13 }
 0xa03   : > { %v1386_v16 = vpop.f32.mrf.mxu3 }
 0xa04   : > { %v1389_v19 = vadd.f32 %v1386_v16, %v1276_v17  ;;  %v1619_v16 = vperm.slane %v1773_v44, 2 }
 0xa0b   : > { %v1498_v20 = vpop.f32.mrf.mxu3 }
 0xa0c   : > { %v1501_v21 = vadd.f32 %v1498_v20, %v1389_v19  ;;  %v1621_v19 = vperm.slane %v1773_v44, 3 }
 0xa0e   : > { %v1502_v22 = vadd.f32 %v1501_v21, %v2321_v25  ;;  %v1796_v25 = vld [vmem:[%s2523_s6 + $0x30] sm:$0xff] }
 0xa0f   : > { %1555 = vmatpush.msrb.mxu0 %v1796_v25 }
 0xa10   : > { %v1503_v14 = vsel %vm437_vm1, %v1502_v22, 0.0 }
 0xa11   : > { %1504 = vadd.xlane.f32.xlu2 %v1503_v14  ;;  %1556 = vmatpush.msrb.mxu0 %v1795_v30 }
 0xa13   : > { %1557 = vmatpush.msrb.mxu0 %v1794_v31 }
 0xa84   : > { %v1505_v23 = vpop.xlane.xlu2 %1504 }
 0xa85   : > { %v1506_v24 = vmul.f32 %v1505_v23, %v2237_v18 }
 0xa87   : > { %v1507_v26 = vsub.f32 %v1502_v22, %v1506_v24 }
 0xa89   : > { %v1508_v27 = vmul.f32 %v1507_v26, %v1507_v26 }
 0xa8b   : > { %v1509_v28 = vsel %vm437_vm1, %v1508_v27, 0.0 }
 0xa8c   : > { %1510 = vadd.xlane.f32.xlu0 %v1509_v28 }
 0xaff   : > { %v1511_v35 = vpop.xlane.xlu0 %1510 }
 0xb00   : > { %v1512_v36 = vmul.f32 %v1511_v35, %v2237_v18 }
 0xb02   : > { %v1513_v38 = vadd.f32 1e-05, %v1512_v36 }
 0xb04   : > { %1894 = vrsqrt.f32 %v1513_v38  ;;  %vm1520_vm0 = vweird.f32 %v1513_v38 }
 0xb0a   : > { %v1895_v40 = vpop.eup %1894 }
 0xb0b   : > { %v1515_v41 = vmul.f32 %v1895_v40, %v1513_v38  ;;  %vm1521_vm2 = vweird.f32 %v1895_v40 }
 0xb0c   : > { %vm1522_vm3 = vmor %vm1520_vm0, %vm1521_vm2 }
 0xb0d   : > { %v1516_v42 = vmul.f32 %v1895_v40, %v1515_v41 }
 0xb0f   : > { %v1517_v43 = vmul.f32 0.5, %v1516_v42 }
 0xb11   : > { %v1518_v45 = vsub.f32 1.5, %v1517_v43 }
 0xb13   : > { %v1519_v46 = vmul.f32 %v1895_v40, %v1518_v45 }
 0xb15   : > { %v1523_v48 = vsel %vm1522_vm3, %v1895_v40, %v1519_v46 }
 0xb16   : > { %v1524_v49 = vmul.f32 %v1523_v48, %v1507_v26 }
 0xb18   : > { %v1526_v51 = vmul.f32 %v1525_v47, %v1524_v49 }
 0xb1a   : > { %v1528_v52 = vadd.f32 %v1527_v50, %v1526_v51 }
 0xb1c   : > { %1799 = vmatmul.msk.f32.vlgmr.msrb.gmra.mxu0 %vm437_vm1, %v1528_v52 }
 0xb99   : > { %v1559_v57 = vpop.f32.mrf.mxu0 }
 0xb9a   : > { %v1560_v58 = vadd.f32 %v1855_v56, %v1559_v57 }
 0xb9c   : > { %v1562_v59 = vmax.f32 %v1560_v58, 0.0 }
 0xb9e   : > { %1808 = vmatmul.msk.f32.vlgmr.msra.gmra.mxu2 %vm966_vm9, %v1562_v59 }
 0xc21   : > { %v1593_v61 = vpop.f32.mrf.mxu2 }
 0xc22   : > { %v1594_v62 = vadd.f32 %v1593_v61, %v1572_v60 }
 0xc24   : > { %v1596_v63 = vadd.f32 %v1594_v62, %v1528_v52 }
 0xc26   : > { %v1597_v9 = vsel %vm437_vm1, %v1596_v63, 0.0 }
 0xc27   : > { %1598 = vadd.xlane.f32.xlu1 %v1597_v9 }
 0xc9a   : > { %v1599_v0 = vpop.xlane.xlu1 %1598 }
 0xc9b   : > { %v1600_v1 = vmul.f32 %v1599_v0, %v2237_v18 }
 0xc9d   : > { %v1601_v2 = vsub.f32 %v1596_v63, %v1600_v1 }
 0xc9f   : > { %v1602_v3 = vmul.f32 %v1601_v2, %v1601_v2 }
 0xca1   : > { %v1603_v4 = vsel %vm437_vm1, %v1602_v3, 0.0 }
 0xca2   : > { %1604 = vadd.xlane.f32.xlu2 %v1603_v4 }
 0xd15   : > { %v1605_v5 = vpop.xlane.xlu2 %1604 }
 0xd16   : > { %v1606_v6 = vmul.f32 %v1605_v5, %v2237_v18 }
 0xd18   : > { %v1607_v7 = vadd.f32 1e-05, %v1606_v6 }
 0xd1a   : > { %1896 = vrsqrt.f32 %v1607_v7  ;;  %vm1614_vm4 = vweird.f32 %v1607_v7 }
 0xd20   : > { %v1897_v8 = vpop.eup %1896 }
 0xd21   : > { %v1609_v10 = vmul.f32 %v1897_v8, %v1607_v7  ;;  %vm1615_vm9 = vweird.f32 %v1897_v8 }
 0xd22   : > { %vm1616_vm5 = vmor %vm1614_vm4, %vm1615_vm9 }
 0xd23   : > { %v1610_v11 = vmul.f32 %v1897_v8, %v1609_v10 }
 0xd25   : > { %v1611_v12 = vmul.f32 0.5, %v1610_v11 }
 0xd27   : > { %v1612_v13 = vsub.f32 1.5, %v1611_v12 }
 0xd29   : > { %v1613_v15 = vmul.f32 %v1897_v8, %v1612_v13 }
 0xd2b   : > { %v1617_v18 = vsel %vm1616_vm5, %v1897_v8, %v1613_v15 }
 0xd2c   : > { %v1618_v17 = vmul.f32 %v1617_v18, %v1601_v2 }
 0xd2e   : > { %v1620_v20 = vmul.f32 %v1619_v16, %v1618_v17 }
 0xd30   : > { %v1622_v21 = vadd.f32 %v1621_v19, %v1620_v20 }
 0xd32   : > { %1623 = vst.msk [vmem:[%s363_s21] sm:$0xff] %vm437_vm1, %v1622_v21 }
 0xd33   : > { %1925 = shalt.err (!%p1922_p3)
}
 0xd34   : > { %1813 = dma.vmem_to_hbm [thread:$0]  (%p2056_p5), %s1638_s28, 128, %s1640_s29, %s1625_s17  }
 0xd35 PF: > { %p1819_p4 = scmp.ge.s32.totalorder %s1960_s16, 2  ;;  %s1651_s11 = sand.u32 1, %s1948_s13  }
 0xd36   : > { %s1652_s26 = scalar_lea.sflag [#allocation3], %s1651_s11 }
 0xd37   : > { %p1816_p7 = pnand %p1819_p4, %p2060_p6 }
 0xd39   : > { %p1817_p8 = pneg %p1816_p7 }
 0xd3b   : > { %1943 = dma.done.wait (%p1817_p8), %s1652_s26, 128  }
 0xd3c   : > { %1945 = vsyncadd (%p1817_p8), %s1652_s26, 4294967168  ;;  %p20_p9 = scmp.ge.s32.totalorder %s2043_s19, 4   ;;  %s2532_s13 = smov %s1952_s14 }
 0xd3d   : > { %s2533_s14 = smov %s1956_s15  ;;  %s2534_s15 = smov %s2054_s22 }
 0xd3e   : > { %s2535_s16 = smov %s2043_s19  ;;  %22 = sbr.rel (!%p20_p9) target bundleno = 5 (0x5), region = 104 }
 0xd43   :  { %1658 = vsyncpa [#allocation3], 1 }
 0xd44   :  { %1660 = vsyncpa [#allocation3 + $0x1], 1 }

</bundles_post_ra>
